<compile_context>
chip_gen: v7x
topology: tpu7x:2x2x1
jax: 0.10.0
libtpu: 0.0.40
codegen_flags: <defaults>
</compile_context>

<pallas_src>
import functools

import jax
import jax.numpy as jnp
from jax.experimental import pallas as pl
from jax.experimental.pallas import tpu as pltpu

N, C_IN, H, W = 1, 384, 7, 7
C_OUT = 2304
EPS = 1e-3                      # BatchNorm2d(eps=0.001)
P = N * H * W                   # 49 rows (sublane tail masked by Mosaic)


def _is_v7x():
    try:
        return "v7" in jax.devices()[0].device_kind.lower()
    except Exception:
        return False


OUTER = 2                                  # C_OUT halves; candidate megacore axis
INNER = 3 if _is_v7x() else 1              # >=2 sequential steps/core on v7x only
NT = OUTER * INNER
TN = C_OUT // NT                           # 1152 (9*128) or 384 (3*128) -- lane aligned


def fused_add_conv_bn_kernel(x1_ref, x2_ref, w_ref, g_ref, b_ref, o_ref, xs_ref,
                             *, inv_p):
    # Hoisted elementwise add + bf16 cast: once per outer index.  Guarding on the
    # *inner* (sequential) axis keeps it correct even if the outer axis is sharded
    # across TensorCores (each core re-initializes its own scratch).
    @pl.when(pl.program_id(1) == 0)
    def _():
        xs_ref[...] = (x1_ref[...] + x2_ref[...]).astype(jnp.bfloat16)

    # 1x1 conv == matmul on the MXU: bf16 x bf16 -> f32 accumulation.
    y = jnp.dot(xs_ref[...], w_ref[...], preferred_element_type=jnp.float32)  # (P, TN)

    # BatchNorm2d training-mode per-channel stats (biased variance), exact over P=49.
    s1 = jnp.sum(y, axis=0, keepdims=True)                                     # (1, TN)
    s2 = jnp.sum(y * y, axis=0, keepdims=True)                                 # (1, TN)
    mean = s1 * inv_p
    var = jnp.maximum(s2 * inv_p - mean * mean, 0.0)   # clamp: cancellation guard
    inv = jax.lax.rsqrt(var + EPS)
    scale = g_ref[...] * inv                                                   # (1, TN)
    shift = b_ref[...] - mean * scale                                          # (1, TN)
    o_ref[...] = y * scale + shift                     # single fused FMA pass


_cost = pl.CostEstimate(
    flops=2 * P * C_IN * C_OUT,
    transcendentals=0,
    bytes_accessed=(C_IN * C_OUT * 2            # bf16 weight (dominant)
                    + 2 * P * C_IN * 4          # x1, x2 f32
                    + P * C_OUT * 4             # output f32
                    + 2 * C_OUT * 4),           # gamma, beta
)

_fused_call = pl.pallas_call(
    functools.partial(fused_add_conv_bn_kernel, inv_p=1.0 / P),
    out_shape=jax.ShapeDtypeStruct((P, C_OUT), jnp.float32),
    grid=(OUTER, INNER),
    in_specs=[
        pl.BlockSpec((P, C_IN), lambda i, j: (0, 0)),          # x1 (resident)
        pl.BlockSpec((P, C_IN), lambda i, j: (0, 0)),          # x2 (resident)
        pl.BlockSpec((C_IN, TN), lambda i, j: (0, i * INNER + j)),   # weight tile
        pl.BlockSpec((1, TN), lambda i, j: (0, i * INNER + j)),      # gamma tile
        pl.BlockSpec((1, TN), lambda i, j: (0, i * INNER + j)),      # beta tile
    ],
    out_specs=pl.BlockSpec((P, TN), lambda i, j: (0, i * INNER + j)),
    scratch_shapes=[pltpu.VMEM((P, C_IN), jnp.bfloat16)],      # hoisted (x1+x2) in bf16
    compiler_params=pltpu.CompilerParams(
        dimension_semantics=("parallel", "arbitrary"),
        vmem_limit_bytes=32 * 1024 * 1024,
    ),
    cost_estimate=_cost,
)


def prepare_params(weight, gamma, beta):
    """One-time parameter prep (outside the hot path): transpose + bf16-cast the weight."""
    wmat = jnp.asarray(weight, jnp.float32).reshape(C_OUT, C_IN).T.astype(jnp.bfloat16)
    g = jnp.asarray(gamma, jnp.float32).reshape(1, C_OUT)
    b = jnp.asarray(beta, jnp.float32).reshape(1, C_OUT)
    return wmat, g, b


@jax.jit
def fused_add_conv_bn(x718, x703, wmat, g, b):
    """x718, x703: (N, C_IN, H, W) f32; wmat: (C_IN, C_OUT) bf16; g/b: (1, C_OUT) f32."""
    n, c, h, w = x718.shape
    p = n * h * w
    # NCHW -> (P, C_in); no pad / slice -- kernel blocks are full-array shaped.
    x1 = jnp.transpose(x718, (0, 2, 3, 1)).reshape(p, c)
    x2 = jnp.transpose(x703, (0, 2, 3, 1)).reshape(p, c)

    out = _fused_call(x1, x2, wmat, g, b)              # (P, C_OUT)

    return jnp.transpose(out.reshape(n, h, w, C_OUT), (0, 3, 1, 2))


def reference(x718, x703, weight, gamma, beta):
    """Pure-JAX f32 reference mirroring PyTorch forward (training-mode BN)."""
    x = x718 + x703
    y = jax.lax.conv_general_dilated(
        x, weight, window_strides=(1, 1), padding="VALID",
        dimension_numbers=("NCHW", "OIHW", "NCHW"),
        precision=jax.lax.Precision.HIGHEST)
    mean = jnp.mean(y, axis=(0, 2, 3), keepdims=True)
    var = jnp.mean(jnp.square(y - mean), axis=(0, 2, 3), keepdims=True)
    return (y - mean) * jax.lax.rsqrt(var + EPS) * gamma.reshape(1, -1, 1, 1) \
        + beta.reshape(1, -1, 1, 1)


if __name__ == "__main__":
    key = jax.random.PRNGKey(0)
    k1, k2, k3, k4, k5 = jax.random.split(key, 5)

    # deterministic synthetic inputs / parameters (shapes from the module __init__)
    x718 = jax.random.normal(k1, (N, C_IN, H, W), dtype=jnp.float32)
    x703 = jax.random.normal(k2, (N, C_IN, H, W), dtype=jnp.float32)
    # Conv2d(384, 2304, kernel_size=1, bias=False)
    weight = jax.random.normal(k3, (C_OUT, C_IN, 1, 1), dtype=jnp.float32) * 0.05
    # BatchNorm2d(2304) affine params
    gamma = 1.0 + 0.1 * jax.random.normal(k4, (C_OUT,), dtype=jnp.float32)
    beta = 0.1 * jax.random.normal(k5, (C_OUT,), dtype=jnp.float32)

    # one-time parameter preparation (not in the hot path)
    wmat, g, b = prepare_params(weight, gamma, beta)
    wmat, g, b = jax.block_until_ready((wmat, g, b))

    out = fused_add_conv_bn(x718, x703, wmat, g, b)
    out = jax.block_until_ready(out)

    ref = jax.block_until_ready(reference(x718, x703, weight, gamma, beta))
    assert out.shape == (N, C_OUT, H, W)
    # bf16 weights/activations with f32 accumulation: ~1e-2 worst-case error vs f32.
    assert jnp.allclose(out, ref, rtol=2e-2, atol=2e-2), "mismatch vs JAX reference"

    print("KERNEL_OK")
</pallas_src>

<mosaic_0001>
module attributes {stable_mosaic.version = 11 : i64} {
  func.func @fused_add_conv_bn_kernel(%arg0: i32, %arg1: i32, %arg2: memref<49x384xf32, #tpu.memory_space<vmem>>, %arg3: memref<49x384xf32, #tpu.memory_space<vmem>>, %arg4: memref<384x1152xbf16, #tpu.memory_space<vmem>>, %arg5: memref<1x1152xf32, #tpu.memory_space<vmem>>, %arg6: memref<1x1152xf32, #tpu.memory_space<vmem>>, %arg7: memref<49x1152xf32, #tpu.memory_space<vmem>>, %arg8: memref<49x384xbf16, #tpu.memory_space<vmem>>) attributes {dimension_semantics = [#tpu.dimension_semantics<parallel>, #tpu.dimension_semantics<arbitrary>], iteration_bounds = array<i64: 2, 1>, scalar_prefetch = 0 : i64, scratch_operands = 1 : i64, tpu.core_type = #tpu.core_type<tc>, window_params = [{pipeline_mode = #tpu.pipeline_mode<synchronous>, transform_indices = @transform_0, window_bounds = array<i64: 49, 384>}, {pipeline_mode = #tpu.pipeline_mode<synchronous>, transform_indices = @transform_1, window_bounds = array<i64: 49, 384>}, {transform_indices = @transform_2, window_bounds = array<i64: 384, 1152>}, {transform_indices = @transform_3, window_bounds = array<i64: 1, 1152>}, {transform_indices = @transform_4, window_bounds = array<i64: 1, 1152>}, {transform_indices = @transform_5, window_bounds = array<i64: 49, 1152>}]} {
    %c0_i32 = arith.constant 0 : i32
    %0 = arith.cmpi eq, %arg1, %c0_i32 : i32
    %1 = arith.extui %0 : i1 to i32
    %c0_i32_0 = arith.constant 0 : i32
    %2 = arith.cmpi ne, %1, %c0_i32_0 : i32
    scf.if %2 {
      %c0_16 = arith.constant 0 : index
      %c0_17 = arith.constant 0 : index
      %32 = vector.load %arg2[%c0_16, %c0_17] : memref<49x384xf32, #tpu.memory_space<vmem>>, vector<49x384xf32>
      %c0_18 = arith.constant 0 : index
      %c0_19 = arith.constant 0 : index
      %33 = vector.load %arg3[%c0_18, %c0_19] : memref<49x384xf32, #tpu.memory_space<vmem>>, vector<49x384xf32>
      %34 = arith.addf %32, %33 : vector<49x384xf32>
      %35 = arith.truncf %34 : vector<49x384xf32> to vector<49x384xbf16>
      %c0_20 = arith.constant 0 : index
      %c0_21 = arith.constant 0 : index
      %36 = vector.load %arg8[%c0_20, %c0_21] : memref<49x384xbf16, #tpu.memory_space<vmem>>, vector<49x384xbf16>
      tpu.vector_store %arg8[%c0_20, %c0_21], %35 {strides = array<i32>} : memref<49x384xbf16, #tpu.memory_space<vmem>>, vector<49x384xbf16>,
    } else {
    }
    %c0 = arith.constant 0 : index
    %c0_1 = arith.constant 0 : index
    %3 = vector.load %arg8[%c0, %c0_1] : memref<49x384xbf16, #tpu.memory_space<vmem>>, vector<49x384xbf16>
    %c0_2 = arith.constant 0 : index
    %c0_3 = arith.constant 0 : index
    %4 = vector.load %arg4[%c0_2, %c0_3] : memref<384x1152xbf16, #tpu.memory_space<vmem>>, vector<384x1152xbf16>
    %cst = arith.constant dense<0.000000e+00> : vector<49x1152xf32>
    %5 = tpu.matmul %3, %4, %cst {dimension_numbers = #tpu.dot_dimension_numbers<[1], [0], [0], [1], [0, 0, 1, 1], [], []>} : vector<49x384xbf16>, vector<384x1152xbf16>, vector<49x1152xf32> -> vector<49x1152xf32>
    %cst_4 = arith.constant dense<0.000000e+00> : vector<1152xf32>
    %6 = vector.multi_reduction <add>, %5, %cst_4 [0] : vector<49x1152xf32> to vector<1152xf32>
    %7 = vector.shape_cast %6 : vector<1152xf32> to vector<1x1152xf32>
    %8 = arith.mulf %5, %5 : vector<49x1152xf32>
    %cst_5 = arith.constant dense<0.000000e+00> : vector<1152xf32>
    %9 = vector.multi_reduction <add>, %8, %cst_5 [0] : vector<49x1152xf32> to vector<1152xf32>
    %10 = vector.shape_cast %9 : vector<1152xf32> to vector<1x1152xf32>
    %cst_6 = arith.constant 0.0204081628 : f32
    %11 = vector.broadcast %cst_6 : f32 to vector<1x1152xf32>
    %12 = arith.mulf %7, %11 : vector<1x1152xf32>
    %cst_7 = arith.constant 0.0204081628 : f32
    %13 = vector.broadcast %cst_7 : f32 to vector<1x1152xf32>
    %14 = arith.mulf %10, %13 : vector<1x1152xf32>
    %15 = arith.mulf %12, %12 : vector<1x1152xf32>
    %16 = arith.subf %14, %15 : vector<1x1152xf32>
    %cst_8 = arith.constant 0.000000e+00 : f32
    %17 = vector.broadcast %cst_8 : f32 to vector<1x1152xf32>
    %18 = arith.maximumf %16, %17 : vector<1x1152xf32>
    %cst_9 = arith.constant 1.000000e-03 : f32
    %19 = vector.broadcast %cst_9 : f32 to vector<1x1152xf32>
    %20 = arith.addf %18, %19 : vector<1x1152xf32>
    %21 = math.rsqrt %20 : vector<1x1152xf32>
    %c0_10 = arith.constant 0 : index
    %c0_11 = arith.constant 0 : index
    %22 = vector.load %arg5[%c0_10, %c0_11] : memref<1x1152xf32, #tpu.memory_space<vmem>>, vector<1x1152xf32>
    %23 = arith.mulf %22, %21 : vector<1x1152xf32>
    %c0_12 = arith.constant 0 : index
    %c0_13 = arith.constant 0 : index
    %24 = vector.load %arg6[%c0_12, %c0_13] : memref<1x1152xf32, #tpu.memory_space<vmem>>, vector<1x1152xf32>
    %25 = arith.mulf %12, %23 : vector<1x1152xf32>
    %26 = arith.subf %24, %25 : vector<1x1152xf32>
    %27 = vector.broadcast %23 : vector<1x1152xf32> to vector<49x1152xf32>
    %28 = arith.mulf %5, %27 : vector<49x1152xf32>
    %29 = vector.broadcast %26 : vector<1x1152xf32> to vector<49x1152xf32>
    %30 = arith.addf %28, %29 : vector<49x1152xf32>
    %c0_14 = arith.constant 0 : index
    %c0_15 = arith.constant 0 : index
    %31 = vector.load %arg7[%c0_14, %c0_15] : memref<49x1152xf32, #tpu.memory_space<vmem>>, vector<49x1152xf32>
    tpu.vector_store %arg7[%c0_14, %c0_15], %30 {strides = array<i32>} : memref<49x1152xf32, #tpu.memory_space<vmem>>, vector<49x1152xf32>,
    return
  }
  func.func @transform_0(%arg0: i32, %arg1: i32) -> (i32, i32) {
    %c0_i32 = arith.constant 0 : i32
    %c0_i32_0 = arith.constant 0 : i32
    %c0_i32_1 = arith.constant 0 : i32
    return %c0_i32, %c0_i32_0 : i32, i32
  }
  func.func @transform_1(%arg0: i32, %arg1: i32) -> (i32, i32) {
    %c0_i32 = arith.constant 0 : i32
    %c0_i32_0 = arith.constant 0 : i32
    %c0_i32_1 = arith.constant 0 : i32
    return %c0_i32, %c0_i32_0 : i32, i32
  }
  func.func @transform_2(%arg0: i32, %arg1: i32) -> (i32, i32) {
    %c1_i32 = arith.constant 1 : i32
    %0 = arith.muli %arg0, %c1_i32 : i32
    %1 = arith.addi %0, %arg1 : i32
    %c0_i32 = arith.constant 0 : i32
    %c0_i32_0 = arith.constant 0 : i32
    return %c0_i32, %1 : i32, i32
  }
  func.func @transform_3(%arg0: i32, %arg1: i32) -> (i32, i32) {
    %c1_i32 = arith.constant 1 : i32
    %0 = arith.muli %arg0, %c1_i32 : i32
    %1 = arith.addi %0, %arg1 : i32
    %c0_i32 = arith.constant 0 : i32
    %c0_i32_0 = arith.constant 0 : i32
    return %c0_i32, %1 : i32, i32
  }
  func.func @transform_4(%arg0: i32, %arg1: i32) -> (i32, i32) {
    %c1_i32 = arith.constant 1 : i32
    %0 = arith.muli %arg0, %c1_i32 : i32
    %1 = arith.addi %0, %arg1 : i32
    %c0_i32 = arith.constant 0 : i32
    %c0_i32_0 = arith.constant 0 : i32
    return %c0_i32, %1 : i32, i32
  }
  func.func @transform_5(%arg0: i32, %arg1: i32) -> (i32, i32) {
    %c1_i32 = arith.constant 1 : i32
    %0 = arith.muli %arg0, %c1_i32 : i32
    %1 = arith.addi %0, %arg1 : i32
    %c0_i32 = arith.constant 0 : i32
    %c0_i32_0 = arith.constant 0 : i32
    return %c0_i32, %1 : i32, i32
  }
}

</mosaic_0001>

<bundles_post_ra>
// kernel: fused_add_conv_bn.1
= control target key start
LH: loop header
LB: loop body
LE: loop exit
PB: predicated region body
PF: predicated region fallthrough
CT: control target
= control target key end

     0   :  { %s6476_s0 = inlined_call_operand.vmem [shape: f32[49,384], index: 0, kind: input, shape index: {}]   ;;  %s6477_s1 = inlined_call_operand.vmem [shape: f32[49,384], index: 1, kind: input, shape index: {}]   ;;  %s6478_s2 = inlined_call_operand.hbm [shape: bf16[384,2304], index: 2, kind: input, shape index: {}]   ;;  %s6479_s3 = inlined_call_operand.hbm [shape: f32[1,2304], index: 3, kind: input, shape index: {}]   ;;  %s6480_s4 = inlined_call_operand.hbm [shape: f32[1,2304], index: 4, kind: input, shape index: {}]   ;;  %s6481_s5 = inlined_call_operand.vmem [shape: f32[49,2304], index: 5, kind: output, shape index: {}]  }
   0x1   :  { %6547 = sst [smem:[#allocation65_spill]] %s6478_s2 }
   0x2   :  { %6548 = sst [smem:[#allocation66_spill]] %s6479_s3 }
   0x3   :  { %10 = vsyncpa [#allocation4], 0 }
   0x4   :  { %12 = vsyncpa [#allocation4 + $0x1], 0 }
   0x5   :  { %13 = vsyncpa [#allocation6], 0 }
   0x6   :  { %15 = vsyncpa [#allocation6 + $0x1], 0  ;;  %s4713_s18 = smov 0   ;;  %s4715_s19 = smov 0  }
   0x7   :  { %s4717_s20 = smov 0   ;;  %s4719_s21 = smov 0  }
   0x8   :  { %s4721_s22 = smov 0   ;;  %s4723_s23 = smov 0  }
   0x9 LB: > { %s4742_s24 = sadd.s32 4294967295, %s4673_s23   ;;  %s33_s25 = sadd.s32 1, %s4669_s22  ;;  %s4673_s23 = sphi %s4723_s23, %s21_s23   ;;  %s4669_s22 = sphi %s4721_s22, %s6705_s22   ;;  %s4665_s21 = sphi %s4719_s21, %s6704_s21   ;;  %s4661_s20 = sphi %s4717_s20, %s6703_s20   ;;  %s4657_s19 = sphi %s4715_s19, %s6702_s19   ;;  %s4653_s18 = sphi %s4713_s18, %s6701_s18  }
   0xa   : > { %p35_p0 = scmp.ge.s32.totalorder %s33_s25, 2  ;;  %s84_s26 = sadd.s32 1, %s4661_s20 }
   0xb   : > { %p91_p1 = scmp.ne.s32.totalorder %s4661_s20, %s4657_s19  ;;  %p92_p2 = scmp.eq.s32.totalorder %s4673_s23, 0 }
   0xc   : > { %s6707_s25 = smov (%p35_p0, %s33_s25), 0  ;;  %p97_p4 = scmp.ne.s32.totalorder %s4657_s19, %s4653_s18 }
   0xd   : > { %6549 = sst [smem:[#allocation11_spill]] %s6707_s25  ;;  %p4751_p3 = por %p92_p2, %p91_p1 }
   0xe   : > { %s81_s28 = ssub.s32 %s4669_s22, %s6707_s25  ;;  %p98_p5 = scmp.eq.s32.totalorder %s4742_s24, 0 }
   0xf   : > { %p82_p6 = scmp.eq.s32.totalorder %s81_s28, 0  ;;  %p179_p7 = scmp.eq.s32.totalorder %s4742_s24, 1 }
  0x10   : > { %p4760_p8 = por %p98_p5, %p97_p4  ;;  %p4133_p10 = scmp.lt.s32.totalorder %s4673_s23, 2 }
  0x11   : > { %s4765_s30 = scalar_select %p82_p6, %s4661_s20, %s84_s26  }
  0x12   : > { %s6551_s29 = scalar_select %p4760_p8, 1, 0 }
  0x13   : > { %6552 = sst [smem:[#allocation12_spill]] %s4765_s30  ;;  %p4767_p9 = por %p179_p7, %p91_p1 }
  0x14   : > { %s4773_s7 = sand.u32 1, %s4661_s20   ;;  %s233_s8 = sand.u32 1, %s4673_s23  }
  0x15   : > { %s6553_s6 = scalar_select %p4767_p9, 1, 0 }
  0x16   : > { %s4111_s9 = smul.u32 1728, %s4773_s7  ;;  %p4779_p11 = pnand %p4133_p10, %p4751_p3 }
  0x17   : > { %s6482_s11 = smul.u32 9, %s4773_s7  ;;  %s6555_s3 = sld [smem:[#allocation66_spill]] }
  0x18   : > { %s6554_s10 = scalar_select %p4779_p11, 1, 0 }
  0x19   : > { %s215_s12 = scalar_lea.vmem [#allocation3], %s4111_s9  ;;  %s6484_s14 = smul.u32 144, %s4669_s22 }
  0x1a   : > { %s223_s13 = sshll.u32 %s215_s12, 4  ;;  %s237_s15 = scalar_lea.vmem [#allocation5], %s6482_s11  ;;  %s4784_s13 = int_to_ptr.vmem [resolvable:$true] %s223_s13 }
  0x1b   : > { %s246_s16 = sshll.u32 %s237_s15, 4  ;;  %s4800_s27 = scalar_lea.sflag [#allocation6], %s233_s8  ;;  %s4789_s16 = int_to_ptr.vmem [resolvable:$true] %s246_s16 }
  0x1c   : > { %p4806_p1 = pneg %p4779_p11 }
  0x1d   : > { %s4797_s26 = scalar_lea.hbm %s6555_s3, %s6484_s14  ;;  %s4534_s17 = scalar_lea.hbm %s6555_s3, 288 }
  0x1e   : > { %s4529_s28 = scalar_lea.hbm %s4797_s26, 144  ;;  %p4535_p4 = scmp.lt.u32.totalorder %s4797_s26, %s6555_s3 }
  0x1f   : > { %p4530_p0 = scmp.ne.s32.totalorder %s4797_s26, %s4529_s28  ;;  %p4536_p5 = scmp.lt.u32.totalorder %s4534_s17, %s4529_s28 }
  0x20   : > { %p4538_p7 = scmp.lt.u32.totalorder %s4529_s28, %s4797_s26 }
  0x21   : > { %p4532_p2 = pnand %p4806_p1, %p4530_p0  ;;  %p4537_p6 = por %p4536_p5, %p4535_p4 }
  0x23   : > { %p4533_p3 = pneg %p4532_p2  ;;  %p4539_p10 = por %p4538_p7, %p4537_p6 }
  0x25   : > { %p4540_p12 = pnand %p4539_p10, %p4533_p3 }
  0x27   : > { %4543 = shalt.err (!%p4540_p12)
}
  0x28   : > { %s4544_s8 = scalar_lea.vmem %s4789_s16, 144  ;;  %s4675_s12 = smov [#allocation5]  }
  0x29   : > { %p4545_p0 = scmp.ne.s32.totalorder %s4789_s16, %s4544_s8  ;;  %s4549_s15 = sshll.u32 %s4675_s12, 4  ;;  %s4550_s15 = int_to_ptr.vmem [resolvable:$false] %s4549_s15 }
  0x2a   : > { %s4551_s11 = scalar_lea.vmem %s4550_s15, 288  ;;  %p4552_p9 = scmp.lt.s32.totalorder %s4789_s16, %s4550_s15 }
  0x2b   : > { %p4547_p2 = pnand %p4545_p0, %p4806_p1  ;;  %p4553_p8 = scmp.lt.s32.totalorder %s4551_s11, %s4544_s8 }
  0x2d   : > { %p4548_p13 = pneg %p4547_p2  ;;  %p4554_p4 = por %p4553_p8, %p4552_p9 }
  0x2f   : > { %p4555_p5 = pnand %p4554_p4, %p4548_p13 }
  0x31   : > { %4558 = shalt.err (!%p4555_p5)
}
  0x32   : > { %4129 = dma.hbm_to_vmem [thread:$0]  (!%p4779_p11), %s4797_s26, 144, %s4789_s16, %s4800_s27  }
  0x33   : > { %p6557_p12 = scmp.lt.s32.totalorder %s4673_s23, 3  ;;  %p6558_p3 = scmp.ge.s32.totalorder %s4673_s23, 1 }
  0x34   : > { %s3953_s17 = smul.u32 576, %s4669_s22  ;;  %s6560_s2 = sld [smem:[#allocation65_spill]] }
  0x35   : > { %p4834_p6 = pnand %p6558_p3, %p6557_p12  ;;  %s212_s15 = scalar_lea.sflag [#allocation4], %s4773_s7 }
  0x37   : > { %s6559_s28 = scalar_select %p4834_p6, 1, 0 }
  0x3a   : > { %s4842_s12 = scalar_lea.hbm %s6560_s2, %s3953_s17  ;;  %s4564_s14 = scalar_lea.hbm %s6560_s2, 55296 }
  0x3b   : > { %s4559_s11 = scalar_lea.hbm %s4842_s12, 27648  ;;  %p4565_p7 = scmp.lt.u32.totalorder %s4842_s12, %s6560_s2 }
  0x3c   : > { %p4560_p8 = scmp.ne.s32.totalorder %s4842_s12, %s4559_s11  ;;  %p4566_p10 = scmp.lt.u32.totalorder %s4564_s14, %s4559_s11 }
  0x3d   : > { %p4568_p2 = scmp.lt.u32.totalorder %s4559_s11, %s4842_s12 }
  0x3e   : > { %p4562_p9 = pnand %p4560_p8, %p4806_p1  ;;  %p4567_p0 = por %p4566_p10, %p4565_p7 }
  0x40   : > { %p4563_p13 = pneg %p4562_p9  ;;  %p4569_p4 = por %p4568_p2, %p4567_p0 }
  0x42   : > { %p4570_p5 = pnand %p4569_p4, %p4563_p13 }
  0x44   : > { %4573 = shalt.err (!%p4570_p5)
}
  0x45   : > { %s4574_s17 = scalar_lea.vmem %s4784_s13, 27648  ;;  %s4676_s18 = smov [#allocation3]  }
  0x46   : > { %p4575_p12 = scmp.ne.s32.totalorder %s4784_s13, %s4574_s17  ;;  %s4579_s8 = sshll.u32 %s4676_s18, 4  ;;  %s4580_s8 = int_to_ptr.vmem [resolvable:$false] %s4579_s8 }
  0x47   : > { %s4581_s3 = scalar_lea.vmem %s4580_s8, 55296  ;;  %p4582_p9 = scmp.lt.s32.totalorder %s4784_s13, %s4580_s8 }
  0x48   : > { %p4577_p3 = pnand %p4575_p12, %p4806_p1  ;;  %p4583_p6 = scmp.lt.s32.totalorder %s4581_s3, %s4574_s17 }
  0x4a   : > { %p4578_p8 = pneg %p4577_p3  ;;  %p4584_p7 = por %p4583_p6, %p4582_p9 }
  0x4c   : > { %p4585_p10 = pnand %p4584_p7, %p4578_p8 }
  0x4e   : > { %4588 = shalt.err (!%p4585_p10)
}
  0x4f   : > { %s4677_s25 = smov 1152   ;;  %s4678_s14 = smov 576  }
  0x50   : > { %s4679_s11 = smov 36   ;;  %s6561_s16 = smul.u32 144, %s4669_s22 }
  0x51   : > { %4126 = dma.hbm_to_vmem [thread:$0]  (!%p4779_p11), %s4842_s12, 27648, %s4784_s13, %s212_s15, %s4677_s25, %s4678_s14, %s4679_s11  }
  0x52   : > { %s4873_s17 = scalar_lea.hbm %s6480_s4, %s6561_s16  ;;  %s6562_s8 = smul.u32 9, %s4773_s7 }
  0x53   : > { %s4589_s30 = scalar_lea.hbm %s4873_s17, 144  ;;  %s4594_s15 = scalar_lea.hbm %s6480_s4, 288 }
  0x54   : > { %s257_s3 = scalar_lea.vmem [#allocation7], %s6562_s8  ;;  %p4590_p6 = scmp.ne.s32.totalorder %s4873_s17, %s4589_s30 }
  0x55   : > { %s266_s2 = sshll.u32 %s257_s3, 4  ;;  %p4595_p2 = scmp.lt.u32.totalorder %s4873_s17, %s6480_s4  ;;  %s267_s2 = int_to_ptr.vmem [resolvable:$true] %s266_s2 }
  0x56   : > { %p4592_p13 = pnand %p4590_p6, %p4806_p1  ;;  %p4596_p4 = scmp.lt.u32.totalorder %s4594_s15, %s4589_s30 }
  0x57   : > { %p4598_p12 = scmp.lt.u32.totalorder %s4589_s30, %s4873_s17 }
  0x58   : > { %p4593_p0 = pneg %p4592_p13  ;;  %p4597_p5 = por %p4596_p4, %p4595_p2 }
  0x5a   : > { %p4599_p3 = por %p4598_p12, %p4597_p5 }
  0x5c   : > { %p4600_p8 = pnand %p4599_p3, %p4593_p0 }
  0x5e   : > { %4603 = shalt.err (!%p4600_p8)
}
  0x5f   : > { %s4604_s7 = scalar_lea.vmem %s267_s2, 144  ;;  %s4680_s11 = smov [#allocation7]  }
  0x60   : > { %p4605_p9 = scmp.ne.s32.totalorder %s267_s2, %s4604_s7  ;;  %s4609_s16 = sshll.u32 %s4680_s11, 4  ;;  %s4610_s16 = int_to_ptr.vmem [resolvable:$false] %s4609_s16 }
  0x61   : > { %s4611_s26 = scalar_lea.vmem %s4610_s16, 288  ;;  %p4612_p6 = scmp.lt.s32.totalorder %s267_s2, %s4610_s16 }
  0x62   : > { %p4607_p7 = pnand %p4605_p9, %p4806_p1  ;;  %p4613_p13 = scmp.lt.s32.totalorder %s4611_s26, %s4604_s7 }
  0x64   : > { %p4608_p10 = pneg %p4607_p7  ;;  %p4614_p11 = por %p4613_p13, %p4612_p6 }
  0x66   : > { %p4615_p2 = pnand %p4614_p11, %p4608_p10 }
  0x68   : > { %4618 = shalt.err (!%p4615_p2)
}
  0x69   : > { %p6563_p4 = scmp.ne.s32.totalorder %s6554_s10, 0  ;;  %p6564_p0 = scmp.ne.s32.totalorder %s6559_s28, 0 }
  0x6b   : > { %4132 = dma.hbm_to_vmem [thread:$0]  (!%p6563_p4), %s4873_s17, 144, %s267_s2, %s4800_s27  }
  0x6c   : > { %275 = sbr.rel (%p6564_p0) target bundleno = 704 (0x2c0), region = 40 }
  0x73   : > { %s4898_s30 = sand.u32 1, %s4657_s19   ;;  %p6565_p11 = scmp.ne.s32.totalorder %s6551_s29, 0 }
  0x74   : > { %s4114_s9 = smul.u32 1728, %s4898_s30  ;;  %s278_s18 = scalar_lea.sflag [#allocation4], %s4898_s30 }
  0x76   : > { %s4902_s8 = scalar_lea.vmem [#allocation3], %s4114_s9 }
  0x77   : > { %4644 = dma.done.wait (%p6565_p11), %s278_s18, 27648  }
  0x78   : > { %4646 = vsyncadd (%p6565_p11), %s278_s18, 4294939648  ;;  %s286_s2 = sand.u32 1, %s4742_s24   ;;  %s4115_s10 = smul.u32 9, %s4898_s30 }
  0x79   : > { %s287_s27 = scalar_lea.sflag [#allocation6], %s286_s2 }
  0x7a   : > { %s4912_s28 = scalar_lea.vmem [#allocation5], %s4115_s10 }
  0x7b   : > { %4648 = dma.done.wait (%p6565_p11), %s287_s27, 288  }
  0x7c   : > { %4650 = vsyncadd (%p6565_p11), %s287_s27, 4294967008  ;;  %v4187_v0 = vld [vmem:[%s4902_s8 + $0x4] ss:$36 sps:$4 sm:$0xff]   ;;  %v4189_v1 = vld [vmem:[%s4902_s8 + $0xc] ss:$36 sps:$4 sm:$0xff]   ;;  %vm496_vm0 = vcmask 1040384  }
  0x7d   : > { %1926 = vmatprep.subr.bf16.mxu0 %v4187_v0  ;;  %v4191_v2 = vld [vmem:[%s4902_s8] ss:$36 sps:$4 sm:$0xff]   ;;  %v4192_v3 = vld [vmem:[%s4902_s8 + $0x8] ss:$36 sps:$4 sm:$0xff]   ;;  %2068 = vmatprep.subr.bf16.mxu1 %v4189_v1  ;;  %v4195_v5 = vld [vmem:[%s4902_s8 + $0x54] ss:$36 sps:$4 sm:$0xff]  }
  0x7e   : > { %v4193_v4 = vld [vmem:[%s4902_s8 + $0x4c] ss:$36 sps:$4 sm:$0xff]   ;;  %1927 = vmatpush1.bf16.msra.mxu0 %v4191_v2  ;;  %2069 = vmatpush1.bf16.msra.mxu1 %v4192_v3  ;;  %v4199_v8 = vld [vmem:[%s4902_s8 + $0x94] ss:$36 sps:$4 sm:$0xff]   ;;  %v4201_v9 = vld [vmem:[%s4902_s8 + $0x9c] ss:$36 sps:$4 sm:$0xff]  }
  0x7f   : > { %v4197_v6 = vld [vmem:[%s4902_s8 + $0x48] ss:$36 sps:$4 sm:$0xff]   ;;  %1928 = vmatprep.subr.bf16.mxu0 %v4193_v4  ;;  %v4198_v7 = vld [vmem:[%s4902_s8 + $0x50] ss:$36 sps:$4 sm:$0xff]   ;;  %2070 = vmatprep.subr.bf16.mxu1 %v4195_v5  ;;  %v4204_v11 = vld [vmem:[%s4902_s8 + $0x98] ss:$36 sps:$4 sm:$0xff]  }
  0x80   : > { %v4203_v10 = vld [vmem:[%s4902_s8 + $0x90] ss:$36 sps:$4 sm:$0xff]   ;;  %v4205_v12 = vld [vmem:[%s4902_s8 + $0xdc] ss:$36 sps:$4 sm:$0xff]   ;;  %v4207_v13 = vld [vmem:[%s4902_s8 + $0xe4] ss:$36 sps:$4 sm:$0xff]  }
  0x81   : > { %v4209_v14 = vld [vmem:[%s4902_s8 + $0xd8] ss:$36 sps:$4 sm:$0xff]   ;;  %v4210_v15 = vld [vmem:[%s4902_s8 + $0xe0] ss:$36 sps:$4 sm:$0xff]   ;;  %v4213_v17 = vld [vmem:[%s4902_s8 + $0x12c] ss:$36 sps:$4 sm:$0xff]  }
  0x82   : > { %1929 = vmatpush1.bf16.msra.mxu0 %v4197_v6  ;;  %2071 = vmatpush1.bf16.msra.mxu1 %v4198_v7  ;;  %v4211_v16 = vld [vmem:[%s4902_s8 + $0x124] ss:$36 sps:$4 sm:$0xff]   ;;  %v4217_v20 = vld [vmem:[%s4902_s8 + $0x16c] ss:$36 sps:$4 sm:$0xff]   ;;  %v4219_v21 = vld [vmem:[%s4902_s8 + $0x174] ss:$36 sps:$4 sm:$0xff]  }
  0x83   : > { %1930 = vmatprep.subr.bf16.mxu0 %v4199_v8  ;;  %2072 = vmatprep.subr.bf16.mxu1 %v4201_v9  ;;  %v4215_v18 = vld [vmem:[%s4902_s8 + $0x120] ss:$36 sps:$4 sm:$0xff]   ;;  %v4216_v19 = vld [vmem:[%s4902_s8 + $0x128] ss:$36 sps:$4 sm:$0xff]   ;;  %v4222_v23 = vld [vmem:[%s4902_s8 + $0x170] ss:$36 sps:$4 sm:$0xff]  }
  0x84   : > { %v4221_v22 = vld [vmem:[%s4902_s8 + $0x168] ss:$36 sps:$4 sm:$0xff]   ;;  %v4223_v24 = vld [vmem:[%s4902_s8 + $0x1b4] ss:$36 sps:$4 sm:$0xff]   ;;  %v4225_v25 = vld [vmem:[%s4902_s8 + $0x1bc] ss:$36 sps:$4 sm:$0xff]  }
  0x85   : > { %v4227_v26 = vld [vmem:[%s4902_s8 + $0x1b0] ss:$36 sps:$4 sm:$0xff]   ;;  %v4228_v27 = vld [vmem:[%s4902_s8 + $0x1b8] ss:$36 sps:$4 sm:$0xff]   ;;  %v4231_v29 = vld [vmem:[%s4902_s8 + $0x204] ss:$36 sps:$4 sm:$0xff]  }
  0x86   : > { %1931 = vmatpush1.bf16.msra.mxu0 %v4203_v10  ;;  %2073 = vmatpush1.bf16.msra.mxu1 %v4204_v11  ;;  %v4229_v28 = vld [vmem:[%s4902_s8 + $0x1fc] ss:$36 sps:$4 sm:$0xff]   ;;  %v4235_v32 = vld [vmem:[%s4902_s8 + $0x244] ss:$36 sps:$4 sm:$0xff]   ;;  %v4237_v33 = vld [vmem:[%s4902_s8 + $0x24c] ss:$36 sps:$4 sm:$0xff]  }
  0x87   : > { %1932 = vmatprep.subr.bf16.mxu0 %v4205_v12  ;;  %2074 = vmatprep.subr.bf16.mxu1 %v4207_v13  ;;  %v4233_v30 = vld [vmem:[%s4902_s8 + $0x1f8] ss:$36 sps:$4 sm:$0xff]   ;;  %v4234_v31 = vld [vmem:[%s4902_s8 + $0x200] ss:$36 sps:$4 sm:$0xff]   ;;  %v4240_v35 = vld [vmem:[%s4902_s8 + $0x248] ss:$36 sps:$4 sm:$0xff]  }
  0x88   : > { %v4239_v34 = vld [vmem:[%s4902_s8 + $0x240] ss:$36 sps:$4 sm:$0xff]   ;;  %v4241_v36 = vld [vmem:[%s4902_s8 + $0x28c] ss:$36 sps:$4 sm:$0xff]   ;;  %v4243_v37 = vld [vmem:[%s4902_s8 + $0x294] ss:$36 sps:$4 sm:$0xff]  }
  0x89   : > { %v4245_v38 = vld [vmem:[%s4902_s8 + $0x288] ss:$36 sps:$4 sm:$0xff]   ;;  %v4246_v39 = vld [vmem:[%s4902_s8 + $0x290] ss:$36 sps:$4 sm:$0xff]   ;;  %v4249_v41 = vld [vmem:[%s4902_s8 + $0x2dc] ss:$36 sps:$4 sm:$0xff]  }
  0x8a   : > { %1933 = vmatpush1.bf16.msra.mxu0 %v4209_v14  ;;  %2075 = vmatpush1.bf16.msra.mxu1 %v4210_v15  ;;  %v4247_v40 = vld [vmem:[%s4902_s8 + $0x2d4] ss:$36 sps:$4 sm:$0xff]   ;;  %v4253_v44 = vld [vmem:[%s4902_s8 + $0x31c] ss:$36 sps:$4 sm:$0xff]   ;;  %v4255_v45 = vld [vmem:[%s4902_s8 + $0x324] ss:$36 sps:$4 sm:$0xff]  }
  0x8b   : > { %1934 = vmatprep.subr.bf16.mxu0 %v4211_v16  ;;  %2076 = vmatprep.subr.bf16.mxu1 %v4213_v17  ;;  %v4251_v42 = vld [vmem:[%s4902_s8 + $0x2d0] ss:$36 sps:$4 sm:$0xff]   ;;  %v4252_v43 = vld [vmem:[%s4902_s8 + $0x2d8] ss:$36 sps:$4 sm:$0xff]   ;;  %v4258_v47 = vld [vmem:[%s4902_s8 + $0x320] ss:$36 sps:$4 sm:$0xff]  }
  0x8c   : > { %v4257_v46 = vld [vmem:[%s4902_s8 + $0x318] ss:$36 sps:$4 sm:$0xff]   ;;  %v348_v48 = vld [vmem:[%s6476_s0] sm:$0xff]  ;;  %v4259_v49 = vld [vmem:[%s4902_s8 + $0x364] ss:$36 sps:$4 sm:$0xff]   ;;  %vm499_vm3 = vcmask 1044484  }
  0x8d   : > { %v4261_v50 = vld [vmem:[%s4902_s8 + $0x36c] ss:$36 sps:$4 sm:$0xff]   ;;  %v349_v51 = vld [vmem:[%s6476_s0 + $0x8] sm:$0xff]  ;;  %v351_v52 = vld [vmem:[%s6476_s0 + $0x18] sm:$0xff]  ;;  %vm497_vm1 = vsmask.f32 256 }
  0x8e   : > { %1935 = vmatpush1.bf16.msra.mxu0 %v4215_v18  ;;  %2077 = vmatpush1.bf16.msra.mxu1 %v4216_v19  ;;  %v352_v53 = vld [vmem:[%s6476_s0 + $0x20] sm:$0xff]  ;;  %v370_v55 = vld [vmem:[%s6477_s1 + $0x8] sm:$0xff]  ;;  %v372_v56 = vld [vmem:[%s6477_s1 + $0x18] sm:$0xff]  ;;  %vm500_vm4 = vsmask.f32 4352  ;;  %p6698_p1 = scmp.ne.s32.totalorder %s6553_s6, 0 }
  0x8f   : > { %1936 = vmatprep.subr.bf16.mxu0 %v4217_v20  ;;  %2078 = vmatprep.subr.bf16.mxu1 %v4219_v21  ;;  %v369_v54 = vld [vmem:[%s6477_s1] sm:$0xff]  ;;  %v391_v59 = vadd.f32 %v370_v55, %v349_v51  ;;  %v4994_v60 = vadd.f32 %v372_v56, %v351_v52  ;;  %v4263_v62 = vld [vmem:[%s4902_s8 + $0x360] ss:$36 sps:$4 sm:$0xff]   ;;  %v4267_v1 = vld [vmem:[%s4902_s8 + $0x3b4] ss:$36 sps:$4 sm:$0xff]  }
  0x90   : > { %v373_v57 = vld [vmem:[%s6477_s1 + $0x20] sm:$0xff]  ;;  %v4992_v58 = vadd.f32 %v369_v54, %v348_v48  ;;  %v354_v5 = vld [vmem:[%s6476_s0 + $0x30] sm:$0xff]  ;;  %v4271_v6 = vld [vmem:[%s4902_s8 + $0x3f4] ss:$36 sps:$4 sm:$0xff]  }
  0x91   : > { %v394_v61 = vadd.f32 %v373_v57, %v352_v53  ;;  %v4264_v63 = vld [vmem:[%s4902_s8 + $0x368] ss:$36 sps:$4 sm:$0xff]   ;;  %v4270_v3 = vld [vmem:[%s4902_s8 + $0x3b0] ss:$36 sps:$4 sm:$0xff]   ;;  %v4273_v7 = vld [vmem:[%s4902_s8 + $0x3fc] ss:$36 sps:$4 sm:$0xff]  }
  0x92   : > { %1937 = vmatpush1.bf16.msra.mxu0 %v4221_v22  ;;  %2079 = vmatpush1.bf16.msra.mxu1 %v4222_v23  ;;  %v4265_v0 = vld [vmem:[%s4902_s8 + $0x3ac] ss:$36 sps:$4 sm:$0xff]   ;;  %v355_v8 = vld [vmem:[%s6476_s0 + $0x38] sm:$0xff]  ;;  %v357_v9 = vld [vmem:[%s6476_s0 + $0x48] sm:$0xff] }
  0x93   : > { %1938 = vmatprep.subr.bf16.mxu0 %v4223_v24  ;;  %2080 = vmatprep.subr.bf16.mxu1 %v4225_v25  ;;  %v4269_v2 = vld [vmem:[%s4902_s8 + $0x3a8] ss:$36 sps:$4 sm:$0xff]   ;;  %v5002_v4 = vpack.c.bf16 %v394_v61, %v391_v59  ;;  %v358_v10 = vld [vmem:[%s6476_s0 + $0x50] sm:$0xff]  ;;  %vm5019_vm2 = vmand %vm496_vm0, %vm497_vm1 }
  0x94   : > { %v375_v12 = vld [vmem:[%s6477_s1 + $0x30] sm:$0xff]  ;;  %v376_v13 = vld [vmem:[%s6477_s1 + $0x38] sm:$0xff]  ;;  %v378_v14 = vld [vmem:[%s6477_s1 + $0x48] sm:$0xff] }
  0x95   : > { %v379_v15 = vld [vmem:[%s6477_s1 + $0x50] sm:$0xff]  ;;  %v5035_v16 = vadd.f32 %v375_v12, %v354_v5  ;;  %v397_v17 = vadd.f32 %v376_v13, %v355_v8  ;;  %v5037_v18 = vadd.f32 %v378_v14, %v357_v9  ;;  %1958 = vmatprep.mubr.bf16.mxu0 %v5002_v4  ;;  %2100 = vmatprep.mubr.bf16.mxu1 %v5002_v4  ;;  %vm5043_vm5 = vmand %vm499_vm3, %vm500_vm4  ;;  %v4275_v21 = vld [vmem:[%s4902_s8 + $0x3f0] ss:$36 sps:$4 sm:$0xff]  }
  0x96   : > { %1939 = vmatpush1.bf16.msra.mxu0 %v4227_v26  ;;  %2081 = vmatpush1.bf16.msra.mxu1 %v4228_v27  ;;  %v400_v19 = vadd.f32 %v379_v15, %v358_v10  ;;  %v4276_v22 = vld [vmem:[%s4902_s8 + $0x3f8] ss:$36 sps:$4 sm:$0xff]   ;;  %v4279_v24 = vld [vmem:[%s4902_s8 + $0x444] ss:$36 sps:$4 sm:$0xff]   ;;  %v360_v27 = vld [vmem:[%s6476_s0 + $0x60] sm:$0xff] }
  0x97   : > { %1940 = vmatprep.subr.bf16.mxu0 %v4229_v28  ;;  %2082 = vmatprep.subr.bf16.mxu1 %v4231_v29  ;;  %v4277_v23 = vld [vmem:[%s4902_s8 + $0x43c] ss:$36 sps:$4 sm:$0xff]   ;;  %v4285_v28 = vld [vmem:[%s4902_s8 + $0x484] ss:$36 sps:$4 sm:$0xff]   ;;  %v4288_v29 = vld [vmem:[%s4902_s8 + $0x48c] ss:$36 sps:$4 sm:$0xff]   ;;  %v5119_v59 = vpack.c.bf16 %v5037_v18, %v5035_v16 }
  0x98   : > { %v4281_v25 = vld [vmem:[%s4902_s8 + $0x438] ss:$36 sps:$4 sm:$0xff]   ;;  %v4282_v26 = vld [vmem:[%s4902_s8 + $0x440] ss:$36 sps:$4 sm:$0xff]   ;;  %vm502_vm6 = vmor %vm5043_vm5, %vm5019_vm2  ;;  %v5097_v48 = vpack.c.bf16 %v400_v19, %v397_v17 }
  0x99   : > { %v387_v51 = vld [vmem:[%s6477_s1 + $0x90] sm:$0x1]  ;;  %v388_v52 = vld [vmem:[%s6477_s1 + $0x98] sm:$0x1]  ;;  %v4297_v53 = vld [vmem:[%s4902_s8 + $0x514] ss:$36 sps:$4 sm:$0xff]  }
  0x9a   : > { %1941 = vmatpush1.bf16.msra.mxu0 %v4233_v30  ;;  %2083 = vmatpush1.bf16.msra.mxu1 %v4234_v31  ;;  %v361_v30 = vld [vmem:[%s6476_s0 + $0x68] sm:$0xff]  ;;  %v363_v31 = vld [vmem:[%s6476_s0 + $0x78] sm:$0xff]  ;;  %v4300_v56 = vld [vmem:[%s4902_s8 + $0x51c] ss:$36 sps:$4 sm:$0xff]  }
  0x9b   : > { %1942 = vmatprep.subr.bf16.mxu0 %v4235_v32  ;;  %2084 = vmatprep.subr.bf16.mxu1 %v4237_v33  ;;  %v364_v32 = vld [vmem:[%s6476_s0 + $0x80] sm:$0xff]  ;;  %v503_v57 = vld [vmem:[#allocation2 + $0x48] sm:$0x11]  ;;  %v371_v5 = vld [vmem:[%s6477_s1 + $0x10] sm:$0xff] }
  0x9c   : > { %v381_v33 = vld [vmem:[%s6477_s1 + $0x60] sm:$0xff]  ;;  %v4298_v61 = vld [vmem:[%s4902_s8 + $0x518] ss:$36 sps:$4 sm:$0xff]   ;;  %v4304_v10 = vld [vmem:[%s4902_s8 + $0x560] ss:$36 sps:$4 sm:$0xff]  }
  0x9d   : > { %v4309_v12 = vld [vmem:[%s4902_s8 + $0x5a4] ss:$36 sps:$4 sm:$0xff]   ;;  %v4312_v13 = vld [vmem:[%s4902_s8 + $0x5ac] ss:$36 sps:$4 sm:$0xff]   ;;  %v4318_v20 = vld [vmem:[%s4902_s8 + $0x5f4] ss:$36 sps:$4 sm:$0xff]  }
  0x9e   : > { %1943 = vmatpush1.bf16.msra.mxu0 %v4239_v34  ;;  %2085 = vmatpush1.bf16.msra.mxu1 %v4240_v35  ;;  %v382_v34 = vld [vmem:[%s6477_s1 + $0x68] sm:$0xff]  ;;  %v384_v35 = vld [vmem:[%s6477_s1 + $0x78] sm:$0xff]  ;;  %v4315_v19 = vld [vmem:[%s4902_s8 + $0x5ec] ss:$36 sps:$4 sm:$0xff]  }
  0x9f   : > { %1944 = vmatprep.subr.bf16.mxu0 %v4241_v36  ;;  %2086 = vmatprep.subr.bf16.mxu1 %v4243_v37  ;;  %v385_v36 = vld [vmem:[%s6477_s1 + $0x80] sm:$0xff]  ;;  %v5079_v37 = vadd.f32 %v381_v33, %v360_v27  ;;  %v4307_v16 = vld [vmem:[%s4902_s8 + $0x5a0] ss:$36 sps:$4 sm:$0xff]   ;;  %v4323_v33 = vld [vmem:[%s4902_s8 + $0x634] ss:$36 sps:$4 sm:$0xff]  }
  0xa0   : > { %v4310_v17 = vld [vmem:[%s4902_s8 + $0x5a8] ss:$36 sps:$4 sm:$0xff]  }
  0xa1   : > { %v4355_v11 = vld [vmem:[%s4902_s8 + $0xec] ss:$36 sps:$4 sm:$0xff]  }
  0xa2   : > { %1945 = vmatpush1.bf16.msra.mxu0 %v4245_v38  ;;  %2087 = vmatpush1.bf16.msra.mxu1 %v4246_v39  ;;  %v403_v38 = vadd.f32 %v382_v34, %v361_v30  ;;  %v5081_v39 = vadd.f32 %v384_v35, %v363_v31  ;;  %v4316_v30 = vld [vmem:[%s4902_s8 + $0x5f0] ss:$36 sps:$4 sm:$0xff]   ;;  %v4326_v34 = vld [vmem:[%s4902_s8 + $0x63c] ss:$36 sps:$4 sm:$0xff]  }
  0xa3   : > { %1946 = vmatprep.subr.bf16.mxu0 %v4247_v40  ;;  %2088 = vmatprep.subr.bf16.mxu1 %v4249_v41  ;;  %v406_v40 = vadd.f32 %v385_v36, %v364_v32  ;;  %v5089_v41 = vpack.c.bf16 %v4994_v60, %v4992_v58  ;;  %v4295_v60 = vld [vmem:[%s4902_s8 + $0x510] ss:$36 sps:$4 sm:$0xff]   ;;  %v4324_v36 = vld [vmem:[%s4902_s8 + $0x638] ss:$36 sps:$4 sm:$0xff]  }
  0xa4   : > { %v5156_v18 = vpack.c.bf16 %v5081_v39, %v5079_v37  ;;  %v4321_v35 = vld [vmem:[%s4902_s8 + $0x630] ss:$36 sps:$4 sm:$0xff]   ;;  %v4332_v39 = vld [vmem:[%s4902_s8 + $0x684] ss:$36 sps:$4 sm:$0xff]  }
  0xa6   : > { %1947 = vmatpush1.bf16.msra.mxu0 %v4251_v42  ;;  %2089 = vmatpush1.bf16.msra.mxu1 %v4252_v43  ;;  %v4283_v42 = vld [vmem:[%s4902_s8 + $0x480] ss:$36 sps:$4 sm:$0xff]   ;;  %v4286_v43 = vld [vmem:[%s4902_s8 + $0x488] ss:$36 sps:$4 sm:$0xff]  }
  0xa7   : > { %1948 = vmatprep.subr.bf16.mxu0 %v4253_v44  ;;  %2090 = vmatprep.subr.bf16.mxu1 %v4255_v45  ;;  %v4291_v44 = vld [vmem:[%s4902_s8 + $0x4cc] ss:$36 sps:$4 sm:$0xff]   ;;  %v4294_v45 = vld [vmem:[%s4902_s8 + $0x4d4] ss:$36 sps:$4 sm:$0xff]  }
  0xaa   : > { %1949 = vmatpush1.bf16.msra.mxu0 %v4257_v46  ;;  %2091 = vmatpush1.bf16.msra.mxu1 %v4258_v47  ;;  %v4289_v46 = vld [vmem:[%s4902_s8 + $0x4c8] ss:$36 sps:$4 sm:$0xff]   ;;  %v4292_v47 = vld [vmem:[%s4902_s8 + $0x4d0] ss:$36 sps:$4 sm:$0xff]  }
  0xab   : > { %1950 = vmatprep.subr.bf16.mxu0 %v4259_v49  ;;  %2092 = vmatprep.subr.bf16.mxu1 %v4261_v50  ;;  %v366_v49 = vld [vmem:[%s6476_s0 + $0x90] sm:$0x1]  ;;  %v367_v50 = vld [vmem:[%s6476_s0 + $0x98] sm:$0x1] }
  0xac   : > { %v408_v54 = vadd.f32 %v387_v51, %v366_v49  ;;  %v409_v55 = vadd.f32 %v388_v52, %v367_v50  ;;  %v4330_v49 = vld [vmem:[%s4902_s8 + $0x680] ss:$36 sps:$4 sm:$0xff]   ;;  %v4336_v50 = vld [vmem:[%s4902_s8 + $0x14] ss:$36 sps:$4 sm:$0xff]  }
  0xae   : > { %1951 = vmatpush1.bf16.msra.mxu0 %v4263_v62  ;;  %2093 = vmatpush1.bf16.msra.mxu1 %v4264_v63  ;;  %v3968_v58 = vpack.c.bf16 %v409_v55, %v408_v54  ;;  %v4303_v63 = vld [vmem:[%s4902_s8 + $0x55c] ss:$36 sps:$4 sm:$0xff]   ;;  %v4681_v54 = vmov 0   ;;  %v4334_v55 = vld [vmem:[%s4902_s8 + $0x10] ss:$36 sps:$4 sm:$0xff]  }
  0xaf   : > { %1952 = vmatprep.subr.bf16.mxu0 %v4265_v0  ;;  %2094 = vmatprep.subr.bf16.mxu1 %v4267_v1  ;;  %v4306_v0 = vld [vmem:[%s4902_s8 + $0x564] ss:$36 sps:$4 sm:$0xff]   ;;  %v350_v1 = vld [vmem:[%s6476_s0 + $0x10] sm:$0xff] }
  0xb0   : > { %v504_v62 = vsel %vm502_vm6, %v3968_v58, %v503_v57  ;;  %v392_v8 = vadd.f32 %v371_v5, %v350_v1  ;;  %v4337_v57 = vld [vmem:[%s4902_s8 + $0x18] ss:$36 sps:$4 sm:$0xff]   ;;  %v4343_v5 = vld [vmem:[%s4902_s8 + $0x60] ss:$36 sps:$4 sm:$0xff]  }
  0xb1   : > { %505 = vst [vmem:[#allocation2 + $0x48] sm:$0x11] %v504_v62  ;;  %v4342_v58 = vld [vmem:[%s4902_s8 + $0x5c] ss:$36 sps:$4 sm:$0xff]   ;;  %v4345_v62 = vld [vmem:[%s4902_s8 + $0x64] ss:$36 sps:$4 sm:$0xff]  }
  0xb2   : > { %1953 = vmatpush1.bf16.msra.mxu0 %v4269_v2  ;;  %2095 = vmatpush1.bf16.msra.mxu1 %v4270_v3  ;;  %v5133_v2 = vpack.c.bf16 %v406_v40, %v403_v38  ;;  %v353_v3 = vld [vmem:[%s6476_s0 + $0x28] sm:$0xff]  ;;  %v3957_v14 = vpack.c.bf16 %v392_v8, %v392_v8  ;;  %v4329_v38 = vld [vmem:[%s4902_s8 + $0x67c] ss:$36 sps:$4 sm:$0xff]  }
  0xb3   : > { %1954 = vmatprep.subr.bf16.mxu0 %v4271_v6  ;;  %2096 = vmatprep.subr.bf16.mxu1 %v4273_v7  ;;  %v374_v6 = vld [vmem:[%s6477_s1 + $0x28] sm:$0xff]  ;;  %v362_v40 = vld [vmem:[%s6476_s0 + $0x70] sm:$0xff] }
  0xb4   : > { %v4301_v7 = vld [vmem:[%s4902_s8 + $0x558] ss:$36 sps:$4 sm:$0xff]   ;;  %v395_v9 = vadd.f32 %v374_v6, %v353_v3  ;;  %485 = vst [vmem:[#allocation2 + $0x8] sm:$0xf] %v3957_v14  ;;  %v4349_v6 = vld [vmem:[%s4902_s8 + $0xa4] ss:$36 sps:$4 sm:$0xff]  }
  0xb5   : > { %v4340_v1 = vld [vmem:[%s4902_s8 + $0x58] ss:$36 sps:$4 sm:$0xff]   ;;  %v4353_v14 = vld [vmem:[%s4902_s8 + $0xe8] ss:$36 sps:$4 sm:$0xff]  }
  0xb6   : > { %1955 = vmatpush1.bf16.msra.mxu0 %v4275_v21  ;;  %2097 = vmatpush1.bf16.msra.mxu1 %v4276_v22  ;;  %v3959_v15 = vpack.c.bf16 %v395_v9, %v395_v9  ;;  %v356_v22 = vld [vmem:[%s6476_s0 + $0x40] sm:$0xff] }
  0xb7   : > { %1956 = vmatprep.subr.bf16.mxu0 %v4277_v23  ;;  %2098 = vmatprep.subr.bf16.mxu1 %v4279_v24  ;;  %v359_v23 = vld [vmem:[%s6476_s0 + $0x58] sm:$0xff]  ;;  %v377_v24 = vld [vmem:[%s6477_s1 + $0x40] sm:$0xff] }
  0xb8   : > { %487 = vst [vmem:[#allocation2 + $0x14] sm:$0xf] %v3959_v15  ;;  %v521_v21 = vld [vmem:[#allocation2 + $0x48] sm:$0x11]  ;;  %v398_v27 = vadd.f32 %v377_v24, %v356_v22  ;;  %v4368_v22 = vld [vmem:[%s4902_s8 + $0x17c] ss:$36 sps:$4 sm:$0xff]  }
  0xb9   : > { %v5184_v37 = vcombine.low %v521_v21, %v521_v21  ;;  %v4356_v15 = vld [vmem:[%s4902_s8 + $0xf0] ss:$36 sps:$4 sm:$0xff]   ;;  %v4366_v24 = vld [vmem:[%s4902_s8 + $0x178] ss:$36 sps:$4 sm:$0xff]  }
  0xba   : > { %1957 = vmatpush1.bf16.msra.mxu0 %v4281_v25  ;;  %2099 = vmatpush1.bf16.msra.mxu1 %v4282_v26  ;;  %v380_v25 = vld [vmem:[%s6477_s1 + $0x58] sm:$0xff]  ;;  %v5172_v26 = vcombine.high %v521_v21, %v521_v21  ;;  %v3961_v31 = vpack.c.bf16 %v398_v27, %v398_v27  ;;  %v4363_v21 = vld [vmem:[%s4902_s8 + $0x138] ss:$36 sps:$4 sm:$0xff]  }
  0xbb   : > { %1997 = vmatprep.subr.bf16.mxu0 %v4285_v28  ;;  %2139 = vmatprep.subr.bf16.mxu1 %v4288_v29  ;;  %v401_v28 = vadd.f32 %v380_v25, %v359_v23  ;;  %v4313_v29 = vld [vmem:[%s4902_s8 + $0x5e8] ss:$36 sps:$4 sm:$0xff]   ;;  %v4369_v25 = vld [vmem:[%s4902_s8 + $0x180] ss:$36 sps:$4 sm:$0xff]  }
  0xbc   : > { %489 = vst [vmem:[#allocation2 + $0x20] sm:$0xf] %v3961_v31  ;;  %v4371_v23 = vld [vmem:[%s4902_s8 + $0x184] ss:$36 sps:$4 sm:$0xff]  }
  0xbd   : > { %1959 = vmatmul.mubr.bf16.vlgmr.msra.gmra.mrb[0].mxu0 %v5089_v41  ;;  %2101 = vmatmul.mubr.bf16.vlgmr.msra.gmra.mrb[0].mxu1 %v5089_v41  ;;  %v3963_v32 = vpack.c.bf16 %v401_v28, %v401_v28  ;;  %v4375_v27 = vld [vmem:[%s4902_s8 + $0x1c4] ss:$36 sps:$4 sm:$0xff]   ;;  %v4378_v28 = vld [vmem:[%s4902_s8 + $0x1cc] ss:$36 sps:$4 sm:$0xff]  }
  0xbe   : > { %1998 = vmatpush1.bf16.msra.mxu0 %v4283_v42  ;;  %2140 = vmatpush1.bf16.msra.mxu1 %v4286_v43  ;;  %v365_v42 = vld [vmem:[%s6476_s0 + $0x88] sm:$0xff]  ;;  %v383_v43 = vld [vmem:[%s6477_s1 + $0x70] sm:$0xff]  ;;  %v4376_v31 = vld [vmem:[%s4902_s8 + $0x1c8] ss:$36 sps:$4 sm:$0xff]  }
  0xbf   : > { %1999 = vmatprep.subr.bf16.mxu0 %v4291_v44  ;;  %2141 = vmatprep.subr.bf16.mxu1 %v4294_v45  ;;  %491 = vst [vmem:[#allocation2 + $0x2c] sm:$0xf] %v3963_v32  ;;  %v386_v44 = vld [vmem:[%s6477_s1 + $0x88] sm:$0xff]  ;;  %v4381_v32 = vld [vmem:[%s4902_s8 + $0x20c] ss:$36 sps:$4 sm:$0xff]  }
  0xc0   : > { %1968 = vmatprep.mubr.bf16.mxu0 %v5097_v48  ;;  %2110 = vmatprep.mubr.bf16.mxu1 %v5097_v48  ;;  %v4327_v45 = vld [vmem:[%s4902_s8 + $0x678] ss:$36 sps:$4 sm:$0xff]  }
  0xc2   : > { %2000 = vmatpush1.bf16.msra.mxu0 %v4289_v46  ;;  %2142 = vmatpush1.bf16.msra.mxu1 %v4292_v47  ;;  %v404_v46 = vadd.f32 %v383_v43, %v362_v40  ;;  %v407_v47 = vadd.f32 %v386_v44, %v365_v42  ;;  %v4388_v40 = vld [vmem:[%s4902_s8 + $0x258] ss:$36 sps:$4 sm:$0xff]   ;;  %v4396_v43 = vld [vmem:[%s4902_s8 + $0x2a4] ss:$36 sps:$4 sm:$0xff]  }
  0xc3   : > { %2001 = vmatprep.subr.bf16.mxu0 %v4297_v53  ;;  %2143 = vmatprep.subr.bf16.mxu1 %v4300_v56  ;;  %v4339_v53 = vld [vmem:[%s4902_s8 + $0x1c] ss:$36 sps:$4 sm:$0xff]  }
  0xc4   : > { %v3965_v51 = vpack.c.bf16 %v404_v46, %v404_v46  ;;  %v3967_v52 = vpack.c.bf16 %v407_v47, %v407_v47  ;;  %v5209_v56 = vld [vmem:[#allocation2 + $0x8] ss:$12 sps:$4 sm:$0xff]   ;;  %v4391_v44 = vld [vmem:[%s4902_s8 + $0x298] ss:$36 sps:$4 sm:$0xff]   ;;  %v4399_v46 = vld [vmem:[%s4902_s8 + $0x2e4] ss:$36 sps:$4 sm:$0xff]  }
  0xc5   : > { %1969 = vmatmul.mubr.bf16.gmra.mrb[4].mxu0 %v5119_v59  ;;  %2111 = vmatmul.mubr.bf16.gmra.mrb[4].mxu1 %v5119_v59  ;;  %v4393_v42 = vld [vmem:[%s4902_s8 + $0x29c] ss:$36 sps:$4 sm:$0xff]   ;;  %v4402_v47 = vld [vmem:[%s4902_s8 + $0x2ec] ss:$36 sps:$4 sm:$0xff]  }
  0xc6   : > { %2002 = vmatpush1.bf16.msra.mxu0 %v4295_v60  ;;  %2144 = vmatpush1.bf16.msra.mxu1 %v4298_v61  ;;  %493 = vst [vmem:[#allocation2 + $0x38] sm:$0xf] %v3965_v51  ;;  %495 = vst [vmem:[#allocation2 + $0x44] sm:$0xf] %v3967_v52  ;;  %v368_v60 = vld [vmem:[%s6476_s0 + $0xa0] sm:$0x1] }
  0xc7   : > { %2003 = vmatprep.subr.bf16.mxu0 %v4303_v63  ;;  %2145 = vmatprep.subr.bf16.mxu1 %v4306_v0  ;;  %v389_v61 = vld [vmem:[%s6477_s1 + $0xa0] sm:$0x1]  ;;  %v506_v0 = vld [vmem:[#allocation2 + $0x50] sm:$0x1]  ;;  %v4408_v52 = vld [vmem:[%s4902_s8 + $0x334] ss:$36 sps:$4 sm:$0xff]  }
  0xc8   : > { %1978 = vmatprep.mubr.bf16.mxu0 %v5133_v2  ;;  %2120 = vmatprep.mubr.bf16.mxu1 %v5133_v2  ;;  %v410_v63 = vadd.f32 %v389_v61, %v368_v60  ;;  %v5230_v9 = vld [vmem:[#allocation2 + $0x20] ss:$12 sps:$4 sm:$0xff]   ;;  %v4409_v60 = vld [vmem:[%s4902_s8 + $0x370] ss:$36 sps:$4 sm:$0xff]  }
  0xc9   : > { %v4405_v51 = vld [vmem:[%s4902_s8 + $0x32c] ss:$36 sps:$4 sm:$0xff]   ;;  %v4412_v61 = vld [vmem:[%s4902_s8 + $0x378] ss:$36 sps:$4 sm:$0xff]  }
  0xca   : > { %2004 = vmatpush1.bf16.msra.mxu0 %v4301_v7  ;;  %2146 = vmatpush1.bf16.msra.mxu1 %v4304_v10  ;;  %v3969_v3 = vpack.c.bf16 %v410_v63, %v410_v63  ;;  %v4352_v7 = vld [vmem:[%s4902_s8 + $0xac] ss:$36 sps:$4 sm:$0xff]   ;;  %v4347_v10 = vld [vmem:[%s4902_s8 + $0xa0] ss:$36 sps:$4 sm:$0xff]  }
  0xcb   : > { %2005 = vmatprep.subr.bf16.mxu0 %v4309_v12  ;;  %2147 = vmatprep.subr.bf16.mxu1 %v4312_v13  ;;  %v4350_v12 = vld [vmem:[%s4902_s8 + $0xa8] ss:$36 sps:$4 sm:$0xff]   ;;  %v4358_v13 = vld [vmem:[%s4902_s8 + $0xf4] ss:$36 sps:$4 sm:$0xff]  }
  0xcc   : > { %v507_v8 = vsel %vm5019_vm2, %v3969_v3, %v506_v0  ;;  %v4420_v63 = vld [vmem:[%s4902_s8 + $0x3c4] ss:$36 sps:$4 sm:$0xff]   ;;  %v4415_v0 = vld [vmem:[%s4902_s8 + $0x3b8] ss:$36 sps:$4 sm:$0xff]  }
  0xcd   : > { %1979 = vmatmul.mubr.bf16.gmra.mrb[8].mxu0 %v5156_v18  ;;  %2121 = vmatmul.mubr.bf16.gmra.mrb[8].mxu1 %v5156_v18  ;;  %508 = vst [vmem:[#allocation2 + $0x50] sm:$0x1] %v507_v8  ;;  %v4423_v3 = vld [vmem:[%s4902_s8 + $0x404] ss:$36 sps:$4 sm:$0xff]   ;;  %v4429_v8 = vld [vmem:[%s4902_s8 + $0x44c] ss:$36 sps:$4 sm:$0xff]  }
  0xce   : > { %2006 = vmatpush1.bf16.msra.mxu0 %v4307_v16  ;;  %2148 = vmatpush1.bf16.msra.mxu1 %v4310_v17  ;;  %v4362_v16 = vld [vmem:[%s4902_s8 + $0x134] ss:$36 sps:$4 sm:$0xff]   ;;  %v4365_v17 = vld [vmem:[%s4902_s8 + $0x13c] ss:$36 sps:$4 sm:$0xff]  }
  0xcf   : > { %2007 = vmatprep.subr.bf16.mxu0 %v4315_v19  ;;  %2149 = vmatprep.subr.bf16.mxu1 %v4318_v20  ;;  %v4360_v19 = vld [vmem:[%s4902_s8 + $0x130] ss:$36 sps:$4 sm:$0xff]  }
  0xd0   : > { %1988 = vmatprep.mubr.bf16.mxu0 %v5172_v26  ;;  %2130 = vmatprep.mubr.bf16.mxu1 %v5172_v26  ;;  %v5245_v20 = vld [vmem:[#allocation2 + $0x38] ss:$12 sps:$4 sm:$0xff]  }
  0xd2   : > { %2008 = vmatpush1.bf16.msra.mxu0 %v4313_v29  ;;  %2150 = vmatpush1.bf16.msra.mxu1 %v4316_v30  ;;  %v4373_v29 = vld [vmem:[%s4902_s8 + $0x1c0] ss:$36 sps:$4 sm:$0xff]  }
  0xd3   : > { %2009 = vmatprep.subr.bf16.mxu0 %v4323_v33  ;;  %2151 = vmatprep.subr.bf16.mxu1 %v4326_v34  ;;  %v4384_v33 = vld [vmem:[%s4902_s8 + $0x214] ss:$36 sps:$4 sm:$0xff]   ;;  %v4379_v34 = vld [vmem:[%s4902_s8 + $0x208] ss:$36 sps:$4 sm:$0xff]  }
  0xd4   : > { %v5259_v30 = vld [vmem:[#allocation2 + $0x50] ss:$0 sps:$4 sm:$0x11]  }
  0xd5   : > { %1989 = vmatmul.mubr.bf16.gmra.mrb[12].mxu0 %v5184_v37  ;;  %2131 = vmatmul.mubr.bf16.gmra.mrb[12].mxu1 %v5184_v37 }
  0xd6   : > { %2010 = vmatpush1.bf16.msra.mxu0 %v4321_v35  ;;  %2152 = vmatpush1.bf16.msra.mxu1 %v4324_v36  ;;  %v4382_v35 = vld [vmem:[%s4902_s8 + $0x210] ss:$36 sps:$4 sm:$0xff]  }
  0xd7   : > { %2011 = vmatprep.subr.bf16.mxu0 %v4329_v38  ;;  %2153 = vmatprep.subr.bf16.mxu1 %v4332_v39  ;;  %v4387_v36 = vld [vmem:[%s4902_s8 + $0x254] ss:$36 sps:$4 sm:$0xff]   ;;  %v4390_v38 = vld [vmem:[%s4902_s8 + $0x25c] ss:$36 sps:$4 sm:$0xff]  }
  0xd8   : > { %2029 = vmatprep.mubr.bf16.mxu0 %v4681_v54  ;;  %2171 = vmatprep.mubr.bf16.mxu1 %v4681_v54  ;;  %v4385_v39 = vld [vmem:[%s4902_s8 + $0x250] ss:$36 sps:$4 sm:$0xff]  }
  0xda   : > { %2012 = vmatpush1.bf16.msra.mxu0 %v4327_v45  ;;  %2154 = vmatpush1.bf16.msra.mxu1 %v4330_v49  ;;  %v4394_v45 = vld [vmem:[%s4902_s8 + $0x2a0] ss:$36 sps:$4 sm:$0xff]  }
  0xdb   : > { %2210 = vmatprep.subr.bf16.mxu0 %v4336_v50  ;;  %2352 = vmatprep.subr.bf16.mxu1 %v4339_v53  ;;  %v4397_v49 = vld [vmem:[%s4902_s8 + $0x2e0] ss:$36 sps:$4 sm:$0xff]   ;;  %v4400_v50 = vld [vmem:[%s4902_s8 + $0x2e8] ss:$36 sps:$4 sm:$0xff]  }
  0xdc   : > { %v4403_v53 = vld [vmem:[%s4902_s8 + $0x328] ss:$36 sps:$4 sm:$0xff]  }
  0xdd   : > { %2030 = vmatmul.mubr.bf16.vlgmr.msra.gmra.mrb[0].mxu0 %v5209_v56  ;;  %2172 = vmatmul.mubr.bf16.vlgmr.msra.gmra.mrb[0].mxu1 %v5209_v56 }
  0xde   : > { %2211 = vmatpush1.bf16.msra.mxu0 %v4334_v55  ;;  %2353 = vmatpush1.bf16.msra.mxu1 %v4337_v57  ;;  %v4406_v55 = vld [vmem:[%s4902_s8 + $0x330] ss:$36 sps:$4 sm:$0xff]  }
  0xdf   : > { %2212 = vmatprep.subr.bf16.mxu0 %v4342_v58  ;;  %2354 = vmatprep.subr.bf16.mxu1 %v4345_v62  ;;  %v4411_v57 = vld [vmem:[%s4902_s8 + $0x374] ss:$36 sps:$4 sm:$0xff]   ;;  %v4414_v58 = vld [vmem:[%s4902_s8 + $0x37c] ss:$36 sps:$4 sm:$0xff]  }
  0xe0   : > { %2039 = vmatprep.mubr.bf16.mxu0 %v4681_v54  ;;  %2181 = vmatprep.mubr.bf16.mxu1 %v4681_v54  ;;  %v4417_v62 = vld [vmem:[%s4902_s8 + $0x3bc] ss:$36 sps:$4 sm:$0xff]  }
  0xe2   : > { %2213 = vmatpush1.bf16.msra.mxu0 %v4340_v1  ;;  %2355 = vmatpush1.bf16.msra.mxu1 %v4343_v5  ;;  %v4418_v1 = vld [vmem:[%s4902_s8 + $0x3c0] ss:$36 sps:$4 sm:$0xff]   ;;  %v4426_v5 = vld [vmem:[%s4902_s8 + $0x40c] ss:$36 sps:$4 sm:$0xff]  }
  0xe3   : > { %2214 = vmatprep.subr.bf16.mxu0 %v4349_v6  ;;  %2356 = vmatprep.subr.bf16.mxu1 %v4352_v7  ;;  %v4421_v6 = vld [vmem:[%s4902_s8 + $0x400] ss:$36 sps:$4 sm:$0xff]   ;;  %v4424_v7 = vld [vmem:[%s4902_s8 + $0x408] ss:$36 sps:$4 sm:$0xff]  }
  0xe5   : > { %2040 = vmatmul.mubr.bf16.gmra.mrb[4].mxu0 %v5230_v9  ;;  %2182 = vmatmul.mubr.bf16.gmra.mrb[4].mxu1 %v5230_v9 }
  0xe6   : > { %2215 = vmatpush1.bf16.msra.mxu0 %v4347_v10  ;;  %2357 = vmatpush1.bf16.msra.mxu1 %v4350_v12  ;;  %v4432_v10 = vld [vmem:[%s4902_s8 + $0x454] ss:$36 sps:$4 sm:$0xff]   ;;  %v4427_v12 = vld [vmem:[%s4902_s8 + $0x448] ss:$36 sps:$4 sm:$0xff]  }
  0xe7   : > { %2216 = vmatprep.subr.bf16.mxu0 %v4355_v11  ;;  %2358 = vmatprep.subr.bf16.mxu1 %v4358_v13  ;;  %v4430_v11 = vld [vmem:[%s4902_s8 + $0x450] ss:$36 sps:$4 sm:$0xff]  }
  0xe8   : > { %2049 = vmatprep.mubr.bf16.mxu0 %v4681_v54  ;;  %2191 = vmatprep.mubr.bf16.mxu1 %v4681_v54  ;;  %v4435_v13 = vld [vmem:[%s4902_s8 + $0x494] ss:$36 sps:$4 sm:$0xff]  }
  0xea   : > { %2217 = vmatpush1.bf16.msra.mxu0 %v4353_v14  ;;  %2359 = vmatpush1.bf16.msra.mxu1 %v4356_v15  ;;  %v4438_v14 = vld [vmem:[%s4902_s8 + $0x49c] ss:$36 sps:$4 sm:$0xff]   ;;  %v4433_v15 = vld [vmem:[%s4902_s8 + $0x490] ss:$36 sps:$4 sm:$0xff]  }
  0xeb   : > { %2218 = vmatprep.subr.bf16.mxu0 %v4362_v16  ;;  %2360 = vmatprep.subr.bf16.mxu1 %v4365_v17  ;;  %v4436_v16 = vld [vmem:[%s4902_s8 + $0x498] ss:$36 sps:$4 sm:$0xff]  }
  0xec   : > { %v4441_v17 = vld [vmem:[%s4902_s8 + $0x4dc] ss:$36 sps:$4 sm:$0xff]  }
  0xed   : > { %2050 = vmatmul.mubr.bf16.gmra.mrb[8].mxu0 %v5245_v20  ;;  %2192 = vmatmul.mubr.bf16.gmra.mrb[8].mxu1 %v5245_v20 }
  0xee   : > { %2219 = vmatpush1.bf16.msra.mxu0 %v4360_v19  ;;  %2361 = vmatpush1.bf16.msra.mxu1 %v4363_v21  ;;  %v4444_v19 = vld [vmem:[%s4902_s8 + $0x4e4] ss:$36 sps:$4 sm:$0xff]   ;;  %v4439_v21 = vld [vmem:[%s4902_s8 + $0x4d8] ss:$36 sps:$4 sm:$0xff]  }
  0xef   : > { %2220 = vmatprep.subr.bf16.mxu0 %v4368_v22  ;;  %2362 = vmatprep.subr.bf16.mxu1 %v4371_v23  ;;  %v4442_v22 = vld [vmem:[%s4902_s8 + $0x4e0] ss:$36 sps:$4 sm:$0xff]  }
  0xf0   : > { %2059 = vmatprep.mubr.bf16.mxu0 %v4681_v54  ;;  %2201 = vmatprep.mubr.bf16.mxu1 %v4681_v54  ;;  %v4447_v23 = vld [vmem:[%s4902_s8 + $0x524] ss:$36 sps:$4 sm:$0xff]  }
  0xf2   : > { %2221 = vmatpush1.bf16.msra.mxu0 %v4366_v24  ;;  %2363 = vmatpush1.bf16.msra.mxu1 %v4369_v25  ;;  %v4450_v24 = vld [vmem:[%s4902_s8 + $0x52c] ss:$36 sps:$4 sm:$0xff]   ;;  %v4445_v25 = vld [vmem:[%s4902_s8 + $0x520] ss:$36 sps:$4 sm:$0xff]  }
  0xf3   : > { %2222 = vmatprep.subr.bf16.mxu0 %v4375_v27  ;;  %2364 = vmatprep.subr.bf16.mxu1 %v4378_v28  ;;  %v4448_v27 = vld [vmem:[%s4902_s8 + $0x528] ss:$36 sps:$4 sm:$0xff]  }
  0xf4   : > { %v4453_v28 = vld [vmem:[%s4902_s8 + $0x56c] ss:$36 sps:$4 sm:$0xff]  }
  0xf5   : > { %2060 = vmatmul.mubr.bf16.gmra.mrb[12].mxu0 %v5259_v30  ;;  %2202 = vmatmul.mubr.bf16.gmra.mrb[12].mxu1 %v5259_v30 }
  0xf6   : > { %2223 = vmatpush1.bf16.msra.mxu0 %v4373_v29  ;;  %2365 = vmatpush1.bf16.msra.mxu1 %v4376_v31  ;;  %v4456_v29 = vld [vmem:[%s4902_s8 + $0x574] ss:$36 sps:$4 sm:$0xff]   ;;  %v4451_v31 = vld [vmem:[%s4902_s8 + $0x568] ss:$36 sps:$4 sm:$0xff]  }
  0xf7   : > { %2224 = vmatprep.subr.bf16.mxu0 %v4381_v32  ;;  %2366 = vmatprep.subr.bf16.mxu1 %v4384_v33  ;;  %v4454_v32 = vld [vmem:[%s4902_s8 + $0x570] ss:$36 sps:$4 sm:$0xff]  }
  0xf8   : > { %2242 = vmatprep.mubr.bf16.mxu0 %v5002_v4  ;;  %2384 = vmatprep.mubr.bf16.mxu1 %v5002_v4  ;;  %v4459_v33 = vld [vmem:[%s4902_s8 + $0x5b4] ss:$36 sps:$4 sm:$0xff]  }
  0xfa   : > { %2225 = vmatpush1.bf16.msra.mxu0 %v4379_v34  ;;  %2367 = vmatpush1.bf16.msra.mxu1 %v4382_v35  ;;  %v4462_v34 = vld [vmem:[%s4902_s8 + $0x5bc] ss:$36 sps:$4 sm:$0xff]   ;;  %v4457_v35 = vld [vmem:[%s4902_s8 + $0x5b0] ss:$36 sps:$4 sm:$0xff]  }
  0xfb   : > { %2226 = vmatprep.subr.bf16.mxu0 %v4387_v36  ;;  %2368 = vmatprep.subr.bf16.mxu1 %v4390_v38  ;;  %v4460_v36 = vld [vmem:[%s4902_s8 + $0x5b8] ss:$36 sps:$4 sm:$0xff]  }
  0xfc   : > { %v4465_v38 = vld [vmem:[%s4902_s8 + $0x5fc] ss:$36 sps:$4 sm:$0xff]  }
  0xfe   : > { %2227 = vmatpush1.bf16.msra.mxu0 %v4385_v39  ;;  %2369 = vmatpush1.bf16.msra.mxu1 %v4388_v40  ;;  %v4468_v39 = vld [vmem:[%s4902_s8 + $0x604] ss:$36 sps:$4 sm:$0xff]   ;;  %v4463_v40 = vld [vmem:[%s4902_s8 + $0x5f8] ss:$36 sps:$4 sm:$0xff]  }
  0xff   : > { %2228 = vmatprep.subr.bf16.mxu0 %v4393_v42  ;;  %2370 = vmatprep.subr.bf16.mxu1 %v4396_v43  ;;  %v4466_v42 = vld [vmem:[%s4902_s8 + $0x600] ss:$36 sps:$4 sm:$0xff]  }
 0x100   : > { %v4471_v43 = vld [vmem:[%s4902_s8 + $0x644] ss:$36 sps:$4 sm:$0xff]  }
 0x102   : > { %2229 = vmatpush1.bf16.msra.mxu0 %v4391_v44  ;;  %2371 = vmatpush1.bf16.msra.mxu1 %v4394_v45  ;;  %v4474_v44 = vld [vmem:[%s4902_s8 + $0x64c] ss:$36 sps:$4 sm:$0xff]   ;;  %v4469_v45 = vld [vmem:[%s4902_s8 + $0x640] ss:$36 sps:$4 sm:$0xff]  }
 0x103   : > { %2230 = vmatprep.subr.bf16.mxu0 %v4399_v46  ;;  %2372 = vmatprep.subr.bf16.mxu1 %v4402_v47  ;;  %v4472_v46 = vld [vmem:[%s4902_s8 + $0x648] ss:$36 sps:$4 sm:$0xff]  }
 0x104   : > { %v4477_v47 = vld [vmem:[%s4902_s8 + $0x68c] ss:$36 sps:$4 sm:$0xff]  }
 0x106   : > { %2231 = vmatpush1.bf16.msra.mxu0 %v4397_v49  ;;  %2373 = vmatpush1.bf16.msra.mxu1 %v4400_v50  ;;  %v4480_v49 = vld [vmem:[%s4902_s8 + $0x694] ss:$36 sps:$4 sm:$0xff]   ;;  %v4475_v50 = vld [vmem:[%s4902_s8 + $0x688] ss:$36 sps:$4 sm:$0xff]  }
 0x107   : > { %2232 = vmatprep.subr.bf16.mxu0 %v4405_v51  ;;  %2374 = vmatprep.subr.bf16.mxu1 %v4408_v52  ;;  %v4478_v51 = vld [vmem:[%s4902_s8 + $0x690] ss:$36 sps:$4 sm:$0xff]   ;;  %v4481_v52 = vld [vmem:[%s4902_s8 + $0x260] ss:$36 sps:$4 sm:$0xff]  }
 0x10a   : > { %2233 = vmatpush1.bf16.msra.mxu0 %v4403_v53  ;;  %2375 = vmatpush1.bf16.msra.mxu1 %v4406_v55  ;;  %v4483_v53 = vld [vmem:[%s4902_s8 + $0x4a0] ss:$36 sps:$4 sm:$0xff]  }
 0x10b   : > { %2234 = vmatprep.subr.bf16.mxu0 %v4411_v57  ;;  %2376 = vmatprep.subr.bf16.mxu1 %v4414_v58  ;;  %v4482_v55 = vld [vmem:[%s4902_s8 + $0x20] ss:$36 sps:$4 sm:$0xff]   ;;  %v4484_v57 = vld [vmem:[%s4902_s8 + $0x2a8] ss:$36 sps:$4 sm:$0xff]  }
 0x10c   : > { %v4486_v58 = vld [vmem:[%s4902_s8 + $0x4e8] ss:$36 sps:$4 sm:$0xff]  }
 0x10e   : > { %2235 = vmatpush1.bf16.msra.mxu0 %v4409_v60  ;;  %2377 = vmatpush1.bf16.msra.mxu1 %v4412_v61  ;;  %v4485_v60 = vld [vmem:[%s4902_s8 + $0x68] ss:$36 sps:$4 sm:$0xff]   ;;  %v4487_v61 = vld [vmem:[%s4902_s8 + $0x2f0] ss:$36 sps:$4 sm:$0xff]  }
 0x10f   : > { %2236 = vmatprep.subr.bf16.mxu0 %v4417_v62  ;;  %2378 = vmatprep.subr.bf16.mxu1 %v4420_v63  ;;  %v4489_v62 = vld [vmem:[%s4902_s8 + $0x530] ss:$36 sps:$4 sm:$0xff]  }
 0x110   : > { %v4488_v63 = vld [vmem:[%s4902_s8 + $0xb0] ss:$36 sps:$4 sm:$0xff]  }
 0x112   : > { %2237 = vmatpush1.bf16.msra.mxu0 %v4415_v0  ;;  %2379 = vmatpush1.bf16.msra.mxu1 %v4418_v1  ;;  %v4490_v0 = vld [vmem:[%s4902_s8 + $0x338] ss:$36 sps:$4 sm:$0xff]  }
 0x113   : > { %2238 = vmatprep.subr.bf16.mxu0 %v4423_v3  ;;  %2380 = vmatprep.subr.bf16.mxu1 %v4426_v5  ;;  %v4492_v1 = vld [vmem:[%s4902_s8 + $0x578] ss:$36 sps:$4 sm:$0xff]   ;;  %v4493_v5 = vld [vmem:[%s4902_s8 + $0x380] ss:$36 sps:$4 sm:$0xff]  }
 0x114   : > { %v4491_v3 = vld [vmem:[%s4902_s8 + $0xf8] ss:$36 sps:$4 sm:$0xff]  }
 0x116   : > { %2239 = vmatpush1.bf16.msra.mxu0 %v4421_v6  ;;  %2381 = vmatpush1.bf16.msra.mxu1 %v4424_v7  ;;  %v4495_v6 = vld [vmem:[%s4902_s8 + $0x5c0] ss:$36 sps:$4 sm:$0xff]  }
 0x117   : > { %2240 = vmatprep.subr.bf16.mxu0 %v4429_v8  ;;  %2382 = vmatprep.subr.bf16.mxu1 %v4432_v10  ;;  %v4494_v7 = vld [vmem:[%s4902_s8 + $0x140] ss:$36 sps:$4 sm:$0xff]   ;;  %v4496_v8 = vld [vmem:[%s4902_s8 + $0x3c8] ss:$36 sps:$4 sm:$0xff]  }
 0x118   : > { %v4498_v10 = vld [vmem:[%s4902_s8 + $0x608] ss:$36 sps:$4 sm:$0xff]  }
 0x11a   : > { %2241 = vmatpush1.bf16.msra.mxu0 %v4427_v12  ;;  %2383 = vmatpush1.bf16.msra.mxu1 %v4430_v11  ;;  %v4497_v12 = vld [vmem:[%s4902_s8 + $0x188] ss:$36 sps:$4 sm:$0xff]   ;;  %v4499_v11 = vld [vmem:[%s4902_s8 + $0x410] ss:$36 sps:$4 sm:$0xff]  }
 0x11b   : > { %2281 = vmatprep.subr.bf16.mxu0 %v4435_v13  ;;  %2423 = vmatprep.subr.bf16.mxu1 %v4438_v14  ;;  %v4501_v13 = vld [vmem:[%s4902_s8 + $0x650] ss:$36 sps:$4 sm:$0xff]  }
 0x11c   : > { %v4500_v14 = vld [vmem:[%s4902_s8 + $0x1d0] ss:$36 sps:$4 sm:$0xff]  }
 0x11d   : > { %2243 = vmatmul.mubr.bf16.vlgmr.msra.gmra.mrb[16].mxu0 %v5089_v41  ;;  %2385 = vmatmul.mubr.bf16.vlgmr.msra.gmra.mrb[16].mxu1 %v5089_v41 }
 0x11e   : > { %2282 = vmatpush1.bf16.msra.mxu0 %v4433_v15  ;;  %2424 = vmatpush1.bf16.msra.mxu1 %v4436_v16  ;;  %v4502_v15 = vld [vmem:[%s4902_s8 + $0x458] ss:$36 sps:$4 sm:$0xff]  }
 0x11f   : > { %2283 = vmatprep.subr.bf16.mxu0 %v4441_v17  ;;  %2425 = vmatprep.subr.bf16.mxu1 %v4444_v19  ;;  %v4504_v16 = vld [vmem:[%s4902_s8 + $0x698] ss:$36 sps:$4 sm:$0xff]  }
 0x120   : > { %2252 = vmatprep.mubr.bf16.mxu0 %v5097_v48  ;;  %2394 = vmatprep.mubr.bf16.mxu1 %v5097_v48  ;;  %v4503_v17 = vld [vmem:[%s4902_s8 + $0x218] ss:$36 sps:$4 sm:$0xff]   ;;  %s5947_s8 = scalar_lea.vmem [#allocation7], %s4115_s10  ;;  %s4116_s10 = smul.u32 504, %s4898_s30 }
 0x121   : > { %s3970_s30 = smul.u32 (%p6698_p1), 72, %s4665_s21 }
 0x122   : > { %2284 = vmatpush1.bf16.msra.mxu0 %v4439_v21  ;;  %2426 = vmatpush1.bf16.msra.mxu1 %v4442_v22  ;;  %s6148_s27 = scalar_lea.vmem [#allocation8], %s4116_s10 }
 0x123   : > { %2285 = vmatprep.subr.bf16.mxu0 %v4447_v23  ;;  %2427 = vmatprep.subr.bf16.mxu1 %v4450_v24  ;;  %s6336_s24 = scalar_lea.vmem (%p6698_p1), %s6481_s5, %s3970_s30 }
 0x125   : > { %2253 = vmatmul.mubr.bf16.gmra.mrb[20].mxu0 %v5119_v59  ;;  %2395 = vmatmul.mubr.bf16.gmra.mrb[20].mxu1 %v5119_v59 }
 0x126   : > { %2286 = vmatpush1.bf16.msra.mxu0 %v4445_v25  ;;  %2428 = vmatpush1.bf16.msra.mxu1 %v4448_v27 }
 0x127   : > { %2287 = vmatprep.subr.bf16.mxu0 %v4453_v28  ;;  %2429 = vmatprep.subr.bf16.mxu1 %v4456_v29 }
 0x128   : > { %2262 = vmatprep.mubr.bf16.mxu0 %v5133_v2  ;;  %2404 = vmatprep.mubr.bf16.mxu1 %v5133_v2 }
 0x12a   : > { %2288 = vmatpush1.bf16.msra.mxu0 %v4451_v31  ;;  %2430 = vmatpush1.bf16.msra.mxu1 %v4454_v32 }
 0x12b   : > { %2289 = vmatprep.subr.bf16.mxu0 %v4459_v33  ;;  %2431 = vmatprep.subr.bf16.mxu1 %v4462_v34 }
 0x12d   : > { %2263 = vmatmul.mubr.bf16.gmra.mrb[24].mxu0 %v5156_v18  ;;  %2405 = vmatmul.mubr.bf16.gmra.mrb[24].mxu1 %v5156_v18 }
 0x12e   : > { %2290 = vmatpush1.bf16.msra.mxu0 %v4457_v35  ;;  %2432 = vmatpush1.bf16.msra.mxu1 %v4460_v36 }
 0x12f   : > { %2291 = vmatprep.subr.bf16.mxu0 %v4465_v38  ;;  %2433 = vmatprep.subr.bf16.mxu1 %v4468_v39 }
 0x130   : > { %2272 = vmatprep.mubr.bf16.mxu0 %v5172_v26  ;;  %2414 = vmatprep.mubr.bf16.mxu1 %v5172_v26 }
 0x132   : > { %2292 = vmatpush1.bf16.msra.mxu0 %v4463_v40  ;;  %2434 = vmatpush1.bf16.msra.mxu1 %v4466_v42 }
 0x133   : > { %2293 = vmatprep.subr.bf16.mxu0 %v4471_v43  ;;  %2435 = vmatprep.subr.bf16.mxu1 %v4474_v44 }
 0x135   : > { %2273 = vmatmul.mubr.bf16.gmra.mrb[28].mxu0 %v5184_v37  ;;  %2415 = vmatmul.mubr.bf16.gmra.mrb[28].mxu1 %v5184_v37 }
 0x136   : > { %2294 = vmatpush1.bf16.msra.mxu0 %v4469_v45  ;;  %2436 = vmatpush1.bf16.msra.mxu1 %v4472_v46 }
 0x137   : > { %2295 = vmatprep.subr.bf16.mxu0 %v4477_v47  ;;  %2437 = vmatprep.subr.bf16.mxu1 %v4480_v49 }
 0x138   : > { %2313 = vmatprep.mubr.bf16.mxu0 %v4681_v54  ;;  %2455 = vmatprep.mubr.bf16.mxu1 %v4681_v54 }
 0x13a   : > { %2296 = vmatpush1.bf16.msra.mxu0 %v4475_v50  ;;  %2438 = vmatpush1.bf16.msra.mxu1 %v4478_v51 }
 0x13b   : > { %3971 = vmatprep.subr.bf16.mxu0 %v4481_v52  ;;  %4023 = vmatprep.subr.bf16.mxu1 %v4483_v53 }
 0x13d   : > { %2314 = vmatmul.mubr.bf16.vlgmr.msra.gmra.mrb[16].mxu0 %v5209_v56  ;;  %2456 = vmatmul.mubr.bf16.vlgmr.msra.gmra.mrb[16].mxu1 %v5209_v56 }
 0x13e   : > { %3972 = vmatpush3.bf16.msra.mxu0 %v4482_v55  ;;  %4024 = vmatpush3.bf16.msra.mxu1 %v4483_v53 }
 0x13f   : > { %3973 = vmatprep.subr.bf16.mxu0 %v4484_v57  ;;  %4025 = vmatprep.subr.bf16.mxu1 %v4486_v58 }
 0x140   : > { %2323 = vmatprep.mubr.bf16.mxu0 %v4681_v54  ;;  %2465 = vmatprep.mubr.bf16.mxu1 %v4681_v54 }
 0x142   : > { %3974 = vmatpush3.bf16.msra.mxu0 %v4485_v60  ;;  %4026 = vmatpush3.bf16.msra.mxu1 %v4486_v58 }
 0x143   : > { %3975 = vmatprep.subr.bf16.mxu0 %v4487_v61  ;;  %4027 = vmatprep.subr.bf16.mxu1 %v4489_v62 }
 0x145   : > { %2324 = vmatmul.mubr.bf16.gmra.mrb[20].mxu0 %v5230_v9  ;;  %2466 = vmatmul.mubr.bf16.gmra.mrb[20].mxu1 %v5230_v9 }
 0x146   : > { %3976 = vmatpush3.bf16.msra.mxu0 %v4488_v63  ;;  %4028 = vmatpush3.bf16.msra.mxu1 %v4489_v62 }
 0x147   : > { %3977 = vmatprep.subr.bf16.mxu0 %v4490_v0  ;;  %4029 = vmatprep.subr.bf16.mxu1 %v4492_v1 }
 0x148   : > { %2333 = vmatprep.mubr.bf16.mxu0 %v4681_v54  ;;  %2475 = vmatprep.mubr.bf16.mxu1 %v4681_v54 }
 0x14a   : > { %3978 = vmatpush3.bf16.msra.mxu0 %v4491_v3  ;;  %4030 = vmatpush3.bf16.msra.mxu1 %v4492_v1 }
 0x14b   : > { %3979 = vmatprep.subr.bf16.mxu0 %v4493_v5  ;;  %4031 = vmatprep.subr.bf16.mxu1 %v4495_v6 }
 0x14d   : > { %2334 = vmatmul.mubr.bf16.gmra.mrb[24].mxu0 %v5245_v20  ;;  %2476 = vmatmul.mubr.bf16.gmra.mrb[24].mxu1 %v5245_v20 }
 0x14e   : > { %3980 = vmatpush3.bf16.msra.mxu0 %v4494_v7  ;;  %4032 = vmatpush3.bf16.msra.mxu1 %v4495_v6 }
 0x14f   : > { %3981 = vmatprep.subr.bf16.mxu0 %v4496_v8  ;;  %4033 = vmatprep.subr.bf16.mxu1 %v4498_v10 }
 0x150   : > { %2343 = vmatprep.mubr.bf16.mxu0 %v4681_v54  ;;  %2485 = vmatprep.mubr.bf16.mxu1 %v4681_v54 }
 0x152   : > { %3982 = vmatpush3.bf16.msra.mxu0 %v4497_v12  ;;  %4034 = vmatpush3.bf16.msra.mxu1 %v4498_v10 }
 0x153   : > { %3983 = vmatprep.subr.bf16.mxu0 %v4499_v11  ;;  %4035 = vmatprep.subr.bf16.mxu1 %v4501_v13 }
 0x155   : > { %2344 = vmatmul.mubr.bf16.gmra.mrb[28].mxu0 %v5259_v30  ;;  %2486 = vmatmul.mubr.bf16.gmra.mrb[28].mxu1 %v5259_v30 }
 0x156   : > { %3984 = vmatpush3.bf16.msra.mxu0 %v4500_v14  ;;  %4036 = vmatpush3.bf16.msra.mxu1 %v4501_v13 }
 0x157   : > { %3985 = vmatprep.subr.bf16.mxu0 %v4502_v15  ;;  %4037 = vmatprep.subr.bf16.mxu1 %v4504_v16 }
 0x158   : > { %2526 = vmatprep.mubr.bf16.mxu0 %v5002_v4  ;;  %4039 = vmatprep.mubr.bf16.mxu1 %v5209_v56 }
 0x15a   : > { %3986 = vmatpush3.bf16.msra.mxu0 %v4503_v17  ;;  %4038 = vmatpush3.bf16.msra.mxu1 %v4504_v16 }
 0x15d   : > { %2527 = vmatmul.mubr.bf16.vlgmr.msra.gmra.mrb[32].mxu0 %v5089_v41  ;;  %4040 = vmatmul.mubr.bf16.vlgmr.msra.gmra.mrb[32].mxu1 %v5230_v9 }
 0x15e   : > { %2534 = vmatprep.mubr.bf16.mxu0 %v5097_v48  ;;  %4043 = vmatprep.mubr.bf16.mxu1 %v5245_v20 }
 0x165   : > { %2535 = vmatmul.mubr.bf16.gmra.mrb[36].mxu0 %v5119_v59  ;;  %4044 = vmatmul.mubr.bf16.gmra.mrb[36].mxu1 %v5259_v30 }
 0x166   : > { %2542 = vmatprep.mubr.bf16.mxu0 %v5133_v2 }
 0x16d   : > { %2543 = vmatmul.mubr.bf16.gmra.mrb[40].mxu0 %v5156_v18 }
 0x16e   : > { %2550 = vmatprep.mubr.bf16.mxu0 %v5172_v26 }
 0x175   : > { %2551 = vmatmul.mubr.bf16.gmra.mrb[44].mxu0 %v5184_v37 }
 0x1b0   : > { %v5400_v4 = vpop.f32.mrb[0].mxu0  ;;  %v5402_v41 = vpop.f32.mrb[0].mxu1 }
 0x1b1   : > { %v5404_v54 = vpop.f32.mrb[1].mxu0  ;;  %v5406_v48 = vpop.f32.mrb[1].mxu1  ;;  %v2740_v59 = vmul.f32 %v5400_v4, %v5400_v4  ;;  %v2742_v2 = vmul.f32 %v5402_v41, %v5402_v41 }
 0x1b2   : > { %v2741_v18 = vmul.f32 %v5404_v54, %v5404_v54  ;;  %v2743_v26 = vmul.f32 %v5406_v48, %v5406_v48  ;;  %v5416_v37 = vpop.f32.mrb[2].mxu0  ;;  %v5418_v56 = vpop.f32.mrb[2].mxu1 }
 0x1b3   : > { %v2622_v9 = vadd.f32 %v5416_v37, %v5400_v4  ;;  %v2749_v20 = vmul.f32 %v5416_v37, %v5416_v37  ;;  %v2649_v30 = vadd.f32 %v5418_v56, %v5402_v41  ;;  %v2751_v19 = vmul.f32 %v5418_v56, %v5418_v56  ;;  %v5428_v21 = vpop.f32.mrb[3].mxu0  ;;  %v5430_v22 = vpop.f32.mrb[3].mxu1 }
 0x1b4   : > { %v2636_v23 = vadd.f32 %v5428_v21, %v5404_v54  ;;  %v2750_v24 = vmul.f32 %v5428_v21, %v5428_v21  ;;  %v2662_v25 = vadd.f32 %v5430_v22, %v5406_v48  ;;  %v2752_v27 = vmul.f32 %v5430_v22, %v5430_v22 }
 0x1b5   : > { %v2803_v28 = vadd.f32 %v2749_v20, %v2740_v59  ;;  %v2829_v29 = vadd.f32 %v2751_v19, %v2742_v2 }
 0x1b6   : > { %v2816_v31 = vadd.f32 %v2750_v24, %v2741_v18  ;;  %v2842_v32 = vadd.f32 %v2752_v27, %v2743_v26 }
 0x1b8   : > { %v5440_v33 = vpop.f32.mrb[4].mxu0  ;;  %v5442_v34 = vpop.f32.mrb[4].mxu1 }
 0x1b9   : > { %6570 = vst [vmem:[#allocation13_spill] sm:$0xff] %v5440_v33  ;;  %6571 = vst [vmem:[#allocation14_spill] sm:$0xff] %v5442_v34  ;;  %v2623_v35 = vadd.f32 %v2622_v9, %v5440_v33  ;;  %v2758_v36 = vmul.f32 %v5440_v33, %v5440_v33  ;;  %v2650_v38 = vadd.f32 %v2649_v30, %v5442_v34  ;;  %v5450_v40 = vpop.f32.mrb[5].mxu0  ;;  %v5452_v42 = vpop.f32.mrb[5].mxu1 }
 0x1ba   : > { %v2760_v39 = vmul.f32 %v5442_v34, %v5442_v34  ;;  %6572 = vst [vmem:[#allocation15_spill] sm:$0xff] %v5450_v40  ;;  %6573 = vst [vmem:[#allocation16_spill] sm:$0xff] %v5452_v42  ;;  %v2637_v43 = vadd.f32 %v2636_v23, %v5450_v40  ;;  %v2759_v44 = vmul.f32 %v5450_v40, %v5450_v40  ;;  %v5460_v47 = vpop.f32.mrb[6].mxu0  ;;  %v5462_v49 = vpop.f32.mrb[6].mxu1 }
 0x1bb   : > { %v2663_v45 = vadd.f32 %v2662_v25, %v5452_v42  ;;  %v2761_v46 = vmul.f32 %v5452_v42, %v5452_v42  ;;  %6574 = vst [vmem:[#allocation17_spill] sm:$0xff] %v5460_v47  ;;  %6575 = vst [vmem:[#allocation18_spill] sm:$0xff] %v5462_v49  ;;  %v2804_v50 = vadd.f32 %v2803_v28, %v2758_v36  ;;  %v5467_v55 = vpop.f32.mrb[7].mxu0  ;;  %v5469_v57 = vpop.f32.mrb[7].mxu1 }
 0x1bc   : > { %v2830_v51 = vadd.f32 %v2829_v29, %v2760_v39  ;;  %v2624_v52 = vadd.f32 %v2623_v35, %v5460_v47  ;;  %v2767_v53 = vmul.f32 %v5460_v47, %v5460_v47  ;;  %6576 = vst [vmem:[#allocation19_spill] sm:$0xff] %v5467_v55  ;;  %6577 = vst [vmem:[#allocation20_spill] sm:$0xff] %v5469_v57 }
 0x1bd   : > { %v2817_v58 = vadd.f32 %v2816_v31, %v2759_v44  ;;  %v2843_v60 = vadd.f32 %v2842_v32, %v2761_v46  ;;  %v2651_v61 = vadd.f32 %v2650_v38, %v5462_v49  ;;  %v2769_v62 = vmul.f32 %v5462_v49, %v5462_v49 }
 0x1be   : > { %v2805_v63 = vadd.f32 %v2804_v50, %v2767_v53  ;;  %v2638_v0 = vadd.f32 %v2637_v43, %v5467_v55  ;;  %v2768_v1 = vmul.f32 %v5467_v55, %v5467_v55  ;;  %v2664_v3 = vadd.f32 %v2663_v45, %v5469_v57 }
 0x1bf   : > { %v2831_v5 = vadd.f32 %v2830_v51, %v2769_v62  ;;  %v2770_v6 = vmul.f32 %v5469_v57, %v5469_v57 }
 0x1c0   : > { %v2818_v7 = vadd.f32 %v2817_v58, %v2768_v1  ;;  %v5480_v10 = vpop.f32.mrb[8].mxu0  ;;  %v5482_v12 = vpop.f32.mrb[8].mxu1 }
 0x1c1   : > { %v2844_v8 = vadd.f32 %v2843_v60, %v2770_v6  ;;  %6578 = vst [vmem:[#allocation21_spill] sm:$0xff] %v5480_v10  ;;  %6579 = vst [vmem:[#allocation22_spill] sm:$0xff] %v5482_v12  ;;  %v2625_v11 = vadd.f32 %v2624_v52, %v5480_v10  ;;  %v2776_v13 = vmul.f32 %v5480_v10, %v5480_v10  ;;  %v5490_v16 = vpop.f32.mrb[9].mxu0  ;;  %v5492_v17 = vpop.f32.mrb[9].mxu1 }
 0x1c2   : > { %v2652_v14 = vadd.f32 %v2651_v61, %v5482_v12  ;;  %v2778_v15 = vmul.f32 %v5482_v12, %v5482_v12  ;;  %6580 = vst [vmem:[#allocation23_spill] sm:$0xff] %v5490_v16  ;;  %6581 = vst [vmem:[#allocation24_spill] sm:$0xff] %v5492_v17  ;;  %v2639_v59 = vadd.f32 %v2638_v0, %v5490_v16  ;;  %v5500_v9 = vpop.f32.mrb[10].mxu0  ;;  %v5502_v20 = vpop.f32.mrb[10].mxu1 }
 0x1c3   : > { %v2777_v2 = vmul.f32 %v5490_v16, %v5490_v16  ;;  %v2665_v18 = vadd.f32 %v2664_v3, %v5492_v17  ;;  %v2779_v26 = vmul.f32 %v5492_v17, %v5492_v17  ;;  %6582 = vst [vmem:[#allocation25_spill] sm:$0xff] %v5500_v9  ;;  %6583 = vst [vmem:[#allocation26_spill] sm:$0xff] %v5502_v20  ;;  %v5507_v25 = vpop.f32.mrb[11].mxu0  ;;  %v5509_v27 = vpop.f32.mrb[11].mxu1 }
 0x1c4   : > { %v2806_v30 = vadd.f32 %v2805_v63, %v2776_v13  ;;  %v2832_v19 = vadd.f32 %v2831_v5, %v2778_v15  ;;  %v2626_v23 = vadd.f32 %v2625_v11, %v5500_v9  ;;  %v2785_v24 = vmul.f32 %v5500_v9, %v5500_v9  ;;  %6584 = vst [vmem:[#allocation27_spill] sm:$0xff] %v5507_v25 }
 0x1c5   : > { %6585 = vst [vmem:[#allocation28_spill] sm:$0xff] %v5509_v27  ;;  %v2819_v28 = vadd.f32 %v2818_v7, %v2777_v2  ;;  %v2845_v29 = vadd.f32 %v2844_v8, %v2779_v26  ;;  %v2653_v31 = vadd.f32 %v2652_v14, %v5502_v20  ;;  %v2787_v32 = vmul.f32 %v5502_v20, %v5502_v20 }
 0x1c6   : > { %v2807_v35 = vadd.f32 %v2806_v30, %v2785_v24  ;;  %v2640_v36 = vadd.f32 %v2639_v59, %v5507_v25  ;;  %v2786_v38 = vmul.f32 %v5507_v25, %v5507_v25  ;;  %v2666_v39 = vadd.f32 %v2665_v18, %v5509_v27 }
 0x1c7   : > { %v2833_v43 = vadd.f32 %v2832_v19, %v2787_v32  ;;  %v2788_v44 = vmul.f32 %v5509_v27, %v5509_v27 }
 0x1c8   : > { %v2820_v45 = vadd.f32 %v2819_v28, %v2786_v38  ;;  %v5520_v50 = vpop.f32.mrb[12].mxu0  ;;  %v5522_v51 = vpop.f32.mrb[12].mxu1 }
 0x1c9   : > { %v2846_v46 = vadd.f32 %v2845_v29, %v2788_v44  ;;  %6586 = vst [vmem:[#allocation29_spill] sm:$0xff] %v5520_v50  ;;  %6587 = vst [vmem:[#allocation30_spill] sm:$0xff] %v5522_v51  ;;  %v2628_v52 = vsel %vm496_vm0, %v5520_v50, 0.0  ;;  %v2794_v53 = vmul.f32 %v5520_v50, %v5520_v50  ;;  %v2654_v58 = vsel %vm496_vm0, %v5522_v51, 0.0  ;;  %v5532_v61 = vpop.f32.mrb[13].mxu0  ;;  %v5534_v62 = vpop.f32.mrb[13].mxu1 }
 0x1ca   : > { %v2796_v60 = vmul.f32 %v5522_v51, %v5522_v51  ;;  %6588 = vst [vmem:[#allocation31_spill] sm:$0xff] %v5532_v61  ;;  %6589 = vst [vmem:[#allocation32_spill] sm:$0xff] %v5534_v62  ;;  %v2629_v63 = vadd.f32 %v2628_v52, %v2626_v23  ;;  %v2655_v0 = vadd.f32 %v2654_v58, %v2653_v31  ;;  %v2641_v1 = vsel %vm496_vm0, %v5532_v61, 0.0  ;;  %v2065_v5 = vpop.f32.mrb[14].mxu0  ;;  %v2207_v6 = vpop.f32.mrb[14].mxu1 }
 0x1cb   : > { %v2795_v3 = vmul.f32 %v5532_v61, %v5532_v61  ;;  %v2808_v7 = vsel %vm496_vm0, %v2794_v53, 0.0  ;;  %v2642_v11 = vadd.f32 %v2641_v1, %v2640_v36  ;;  %v2667_v13 = vsel %vm496_vm0, %v5534_v62, 0.0  ;;  %v2066_v14 = vpop.f32.mrb[15].mxu0  ;;  %v2208_v15 = vpop.f32.mrb[15].mxu1 }
 0x1cc   : > { %v2834_v8 = vsel %vm496_vm0, %v2796_v60, 0.0  ;;  %v2630_v59 = vrot.slane %v2629_v63, 4  ;;  %v2809_v2 = vadd.f32 %v2808_v7, %v2807_v35  ;;  %v2656_v18 = vrot.slane %v2655_v0, 4 }
 0x1cd   : > { %v2835_v26 = vadd.f32 %v2834_v8, %v2833_v43  ;;  %v2643_v30 = vrot.slane %v2642_v11, 4  ;;  %v2821_v19 = vsel %vm496_vm0, %v2795_v3, 0.0  ;;  %v2668_v23 = vadd.f32 %v2667_v13, %v2666_v39 }
 0x1ce   : > { %v2797_v24 = vmul.f32 %v5534_v62, %v5534_v62  ;;  %v2631_v28 = vadd.f32 %v2630_v59, %v2629_v63  ;;  %v2810_v29 = vrot.slane %v2809_v2, 4  ;;  %v2657_v31 = vadd.f32 %v2656_v18, %v2655_v0 }
 0x1cf   : > { %v2836_v32 = vrot.slane %v2835_v26, 4  ;;  %v2644_v36 = vadd.f32 %v2643_v30, %v2642_v11  ;;  %v2822_v38 = vadd.f32 %v2821_v19, %v2820_v45  ;;  %v2669_v44 = vrot.slane %v2668_v23, 4 }
 0x1d0   : > { %v2847_v52 = vsel %vm496_vm0, %v2797_v24, 0.0  ;;  %v2632_v53 = vrot.slane %v2631_v28, 2  ;;  %v2811_v35 = vadd.f32 %v2810_v29, %v2809_v2  ;;  %v2658_v58 = vrot.slane %v2657_v31, 2 }
 0x1d1   : > { %v2837_v43 = vadd.f32 %v2836_v32, %v2835_v26  ;;  %v2645_v60 = vrot.slane %v2644_v36, 2  ;;  %v2823_v1 = vrot.slane %v2822_v38, 4  ;;  %v2670_v3 = vadd.f32 %v2669_v44, %v2668_v23 }
 0x1d2   : > { %v2848_v39 = vadd.f32 %v2847_v52, %v2846_v46  ;;  %v2633_v5 = vadd.f32 %v2632_v53, %v2631_v28  ;;  %v2812_v6 = vrot.slane %v2811_v35, 2  ;;  %v2659_v7 = vadd.f32 %v2658_v58, %v2657_v31 }
 0x1d3   : > { %v2838_v63 = vrot.slane %v2837_v43, 2  ;;  %v2646_v8 = vadd.f32 %v2645_v60, %v2644_v36  ;;  %v2824_v0 = vadd.f32 %v2823_v1, %v2822_v38  ;;  %v2671_v13 = vrot.slane %v2670_v3, 2 }
 0x1d4   : > { %v2849_v11 = vrot.slane %v2848_v39, 4  ;;  %v2634_v45 = vrot.slane %v2633_v5, 1  ;;  %v2813_v14 = vadd.f32 %v2812_v6, %v2811_v35  ;;  %v2660_v15 = vrot.slane %v2659_v7, 1 }
 0x1d5   : > { %v2839_v59 = vadd.f32 %v2838_v63, %v2837_v43  ;;  %v2647_v18 = vrot.slane %v2646_v8, 1  ;;  %v2825_v2 = vrot.slane %v2824_v0, 2  ;;  %v2672_v30 = vadd.f32 %v2671_v13, %v2670_v3 }
 0x1d6   : > { %v2850_v26 = vadd.f32 %v2849_v11, %v2848_v39  ;;  %v2635_v19 = vadd.f32 %v2634_v45, %v2633_v5  ;;  %v2814_v24 = vrot.slane %v2813_v14, 1  ;;  %v2661_v23 = vadd.f32 %v2660_v15, %v2659_v7 }
 0x1d7   : > { %v2840_v46 = vrot.slane %v2839_v59, 1  ;;  %v2648_v28 = vadd.f32 %v2647_v18, %v2646_v8  ;;  %v2826_v29 = vadd.f32 %v2825_v2, %v2824_v0  ;;  %v2673_v31 = vrot.slane %v2672_v30, 1 }
 0x1d8   : > { %v2851_v32 = vrot.slane %v2850_v26, 2  ;;  %v2815_v36 = vadd.f32 %v2814_v24, %v2813_v14  ;;  %v5548_v38 = vmul.f32 0.020408163, %v2635_v19  ;;  %v5550_v52 = vmul.f32 0.020408163, %v2661_v23 }
 0x1d9   : > { %v2841_v44 = vadd.f32 %v2840_v46, %v2839_v59  ;;  %v2827_v53 = vrot.slane %v2826_v29, 1  ;;  %v5552_v35 = vmul.f32 0.020408163, %v2648_v28  ;;  %v2674_v58 = vadd.f32 %v2673_v31, %v2672_v30 }
 0x1da   : > { %v2852_v43 = vadd.f32 %v2851_v32, %v2850_v26  ;;  %v2929_v60 = vmul.f32 0.020408163, %v2815_v36  ;;  %v2938_v1 = vmul.f32 %v5548_v38, %v5548_v38  ;;  %v2940_v39 = vmul.f32 %v5550_v52, %v5550_v52 }
 0x1db   : > { %v2931_v3 = vmul.f32 0.020408163, %v2841_v44  ;;  %v2828_v5 = vadd.f32 %v2827_v53, %v2826_v29  ;;  %v2939_v6 = vmul.f32 %v5552_v35, %v5552_v35  ;;  %v5560_v63 = vmul.f32 0.020408163, %v2674_v58 }
 0x1dc   : > { %v2853_v7 = vrot.slane %v2852_v43, 1  ;;  %v2947_v8 = vsub.f32 %v2929_v60, %v2938_v1  ;;  %v4682_v28 = vmov 1966171168   ;;  %v3001_v31 = vlaneseq }
 0x1dd   : > { %v2949_v0 = vsub.f32 %v2931_v3, %v2940_v39  ;;  %v2930_v13 = vmul.f32 0.020408163, %v2828_v5  ;;  %v2941_v45 = vmul.f32 %v5560_v63, %v5560_v63  ;;  %v2999_v29 = vunpack.c.l.s4 %v4682_v28 }
 0x1de   : > { %v2854_v11 = vadd.f32 %v2853_v7, %v2852_v43  ;;  %v2956_v14 = vmax.f32 %v2947_v8, 0.0  ;;  %v5564_v36 = vshrl.u32 %v3001_v31, 7 }
 0x1df   : > { %v2958_v15 = vmax.f32 %v2949_v0, 0.0  ;;  %v2948_v59 = vsub.f32 %v2930_v13, %v2939_v6  ;;  %v3000_v32 = vunpack.c.0.s8 %v2999_v29 }
 0x1e0   : > { %v2932_v18 = vmul.f32 0.020408163, %v2854_v11  ;;  %v2965_v2 = vadd.f32 0.001, %v2956_v14 }
 0x1e1   : > { %v2967_v30 = vadd.f32 0.001, %v2958_v15  ;;  %v2957_v26 = vmax.f32 %v2948_v59, 0.0  ;;  %v5567_v58 = vsub.s32 %v3000_v32, %v5564_v36 }
 0x1e2   : > { %v2950_v19 = vsub.f32 %v2932_v18, %v2941_v45  ;;  %4505 = vrsqrt.f32 %v2965_v2 }
 0x1e3   : > { %v2966_v24 = vadd.f32 0.001, %v2957_v26  ;;  %4507 = vrsqrt.f32 %v2967_v30  ;;  %6590 = vst [vmem:[#allocation33_spill] sm:$0xff] %v5567_v58 }
 0x1e4   : > { %v2959_v23 = vmax.f32 %v2950_v19, 0.0 }
 0x1e5   : > { %4509 = vrsqrt.f32 %v2966_v24 }
 0x1e6   : > { %v2968_v46 = vadd.f32 0.001, %v2959_v23 }
 0x1e8   : > { %4511 = vrsqrt.f32 %v2968_v46 }
 0x1ec   : > { %v4506_v44 = vpop.eup %4505 }
 0x1ed   : > { %v4508_v53 = vpop.eup %4507 }
 0x1ef   : > { %v4510_v43 = vpop.eup %4509 }
 0x1f0   : > { %v2994_v60 = vcombine.low %v4506_v44, %v4510_v43 }
 0x1f2   : > { %v4512_v1 = vpop.eup %4511  ;;  %v5570_v3 = vrot.slane %v2994_v60, %v5567_v58 }
 0x1f3   : > { %v2995_v39 = vcombine.low %v4508_v53, %v4512_v1 }
 0x1f5   : > { %v5573_v5 = vrot.slane %v2995_v39, %v5567_v58 }
 0x210   : > { %v5577_v7 = vpop.f32.mrb[16].mxu0  ;;  %v5579_v8 = vpop.f32.mrb[16].mxu1 }
 0x211   : > { %v5581_v0 = vpop.f32.mrb[17].mxu0  ;;  %v5583_v13 = vpop.f32.mrb[17].mxu1  ;;  %v2744_v11 = vmul.f32 %v5577_v7, %v5577_v7  ;;  %v2746_v45 = vmul.f32 %v5579_v8, %v5579_v8 }
 0x212   : > { %v2745_v14 = vmul.f32 %v5581_v0, %v5581_v0  ;;  %v2747_v15 = vmul.f32 %v5583_v13, %v5583_v13  ;;  %v5593_v59 = vpop.f32.mrb[18].mxu0  ;;  %v5595_v18 = vpop.f32.mrb[18].mxu1 }
 0x213   : > { %v2675_v2 = vadd.f32 %v5593_v59, %v5577_v7  ;;  %v2753_v30 = vmul.f32 %v5593_v59, %v5593_v59  ;;  %v2701_v26 = vadd.f32 %v5595_v18, %v5579_v8  ;;  %v2755_v19 = vmul.f32 %v5595_v18, %v5595_v18  ;;  %v5605_v24 = vpop.f32.mrb[19].mxu0  ;;  %v5607_v23 = vpop.f32.mrb[19].mxu1 }
 0x214   : > { %6591 = vst [vmem:[#allocation34_spill] sm:$0xff] %v5607_v23  ;;  %v2688_v46 = vadd.f32 %v5605_v24, %v5581_v0  ;;  %v2754_v28 = vmul.f32 %v5605_v24, %v5605_v24  ;;  %v2714_v29 = vadd.f32 %v5607_v23, %v5583_v13  ;;  %v2756_v31 = vmul.f32 %v5607_v23, %v5607_v23 }
 0x215   : > { %v2855_v32 = vadd.f32 %v2753_v30, %v2744_v11  ;;  %v2881_v44 = vadd.f32 %v2755_v19, %v2746_v45 }
 0x216   : > { %v2868_v53 = vadd.f32 %v2754_v28, %v2745_v14  ;;  %v2894_v43 = vadd.f32 %v2756_v31, %v2747_v15 }
 0x218   : > { %v5617_v60 = vpop.f32.mrb[20].mxu0  ;;  %v5619_v1 = vpop.f32.mrb[20].mxu1 }
 0x219   : > { %6592 = vst [vmem:[#allocation35_spill] sm:$0xff] %v5617_v60  ;;  %6593 = vst [vmem:[#allocation36_spill] sm:$0xff] %v5619_v1  ;;  %v2676_v39 = vadd.f32 %v2675_v2, %v5617_v60  ;;  %v2762_v6 = vmul.f32 %v5617_v60, %v5617_v60  ;;  %v2702_v62 = vadd.f32 %v2701_v26, %v5619_v1  ;;  %v5627_v61 = vpop.f32.mrb[21].mxu0  ;;  %v5629_v11 = vpop.f32.mrb[21].mxu1 }
 0x21a   : > { %v2764_v51 = vmul.f32 %v5619_v1, %v5619_v1  ;;  %6594 = vst [vmem:[#allocation37_spill] sm:$0xff] %v5627_v61  ;;  %6595 = vst [vmem:[#allocation38_spill] sm:$0xff] %v5629_v11  ;;  %v2689_v45 = vadd.f32 %v2688_v46, %v5627_v61  ;;  %v2763_v14 = vmul.f32 %v5627_v61, %v5627_v61  ;;  %v5637_v30 = vpop.f32.mrb[22].mxu0  ;;  %v5639_v26 = vpop.f32.mrb[22].mxu1 }
 0x21b   : > { %v2715_v15 = vadd.f32 %v2714_v29, %v5629_v11  ;;  %v2765_v2 = vmul.f32 %v5629_v11, %v5629_v11  ;;  %6596 = vst [vmem:[#allocation39_spill] sm:$0xff] %v5637_v30  ;;  %6597 = vst [vmem:[#allocation40_spill] sm:$0xff] %v5639_v26  ;;  %v2856_v19 = vadd.f32 %v2855_v32, %v2762_v6  ;;  %v5644_v46 = vpop.f32.mrb[23].mxu0  ;;  %v5646_v27 = vpop.f32.mrb[23].mxu1 }
 0x21c   : > { %v2882_v28 = vadd.f32 %v2881_v44, %v2764_v51  ;;  %v2677_v31 = vadd.f32 %v2676_v39, %v5637_v30  ;;  %v2771_v50 = vmul.f32 %v5637_v30, %v5637_v30  ;;  %6598 = vst [vmem:[#allocation41_spill] sm:$0xff] %v5644_v46  ;;  %6599 = vst [vmem:[#allocation42_spill] sm:$0xff] %v5646_v27 }
 0x21d   : > { %v2869_v20 = vadd.f32 %v2868_v53, %v2763_v14  ;;  %v2895_v29 = vadd.f32 %v2894_v43, %v2765_v2  ;;  %v2703_v25 = vadd.f32 %v2702_v62, %v5639_v26  ;;  %v2773_v9 = vmul.f32 %v5639_v26, %v5639_v26 }
 0x21e   : > { %v2857_v17 = vadd.f32 %v2856_v19, %v2771_v50  ;;  %v2690_v6 = vadd.f32 %v2689_v45, %v5644_v46  ;;  %v2772_v51 = vmul.f32 %v5644_v46, %v5644_v46  ;;  %v2716_v32 = vadd.f32 %v2715_v15, %v5646_v27 }
 0x21f   : > { %v2883_v44 = vadd.f32 %v2882_v28, %v2773_v9  ;;  %v2774_v39 = vmul.f32 %v5646_v27, %v5646_v27 }
 0x220   : > { %v2870_v12 = vadd.f32 %v2869_v20, %v2772_v51  ;;  %v5657_v43 = vpop.f32.mrb[24].mxu0  ;;  %v5659_v62 = vpop.f32.mrb[24].mxu1 }
 0x221   : > { %v2896_v53 = vadd.f32 %v2895_v29, %v2774_v39  ;;  %6600 = vst [vmem:[#allocation43_spill] sm:$0xff] %v5657_v43  ;;  %6601 = vst [vmem:[#allocation44_spill] sm:$0xff] %v5659_v62  ;;  %v2678_v14 = vadd.f32 %v2677_v31, %v5657_v43  ;;  %v2780_v50 = vmul.f32 %v5657_v43, %v5657_v43  ;;  %v5667_v9 = vpop.f32.mrb[25].mxu0  ;;  %v5669_v2 = vpop.f32.mrb[25].mxu1 }
 0x222   : > { %v2704_v45 = vadd.f32 %v2703_v25, %v5659_v62  ;;  %v2782_v15 = vmul.f32 %v5659_v62, %v5659_v62  ;;  %6602 = vst [vmem:[#allocation45_spill] sm:$0xff] %v5667_v9  ;;  %6603 = vst [vmem:[#allocation46_spill] sm:$0xff] %v5669_v2  ;;  %v2691_v20 = vadd.f32 %v2690_v6, %v5667_v9  ;;  %v5677_v29 = vpop.f32.mrb[26].mxu0  ;;  %v5679_v25 = vpop.f32.mrb[26].mxu1 }
 0x223   : > { %v2781_v19 = vmul.f32 %v5667_v9, %v5667_v9  ;;  %v2717_v28 = vadd.f32 %v2716_v32, %v5669_v2  ;;  %v2783_v31 = vmul.f32 %v5669_v2, %v5669_v2  ;;  %6604 = vst [vmem:[#allocation47_spill] sm:$0xff] %v5677_v29  ;;  %6605 = vst [vmem:[#allocation48_spill] sm:$0xff] %v5679_v25  ;;  %v5684_v6 = vpop.f32.mrb[27].mxu0  ;;  %v5686_v16 = vpop.f32.mrb[27].mxu1 }
 0x224   : > { %v2858_v51 = vadd.f32 %v2857_v17, %v2780_v50  ;;  %v2884_v39 = vadd.f32 %v2883_v44, %v2782_v15  ;;  %v2679_v62 = vadd.f32 %v2678_v14, %v5677_v29  ;;  %v2789_v43 = vmul.f32 %v5677_v29, %v5677_v29  ;;  %6606 = vst [vmem:[#allocation49_spill] sm:$0xff] %v5684_v6 }
 0x225   : > { %6607 = vst [vmem:[#allocation50_spill] sm:$0xff] %v5686_v16  ;;  %v2871_v9 = vadd.f32 %v2870_v12, %v2781_v19  ;;  %v2897_v32 = vadd.f32 %v2896_v53, %v2783_v31  ;;  %v2705_v10 = vadd.f32 %v2704_v45, %v5679_v25  ;;  %v2791_v2 = vmul.f32 %v5679_v25, %v5679_v25 }
 0x226   : > { %v2859_v27 = vadd.f32 %v2858_v51, %v2789_v43  ;;  %v2692_v17 = vadd.f32 %v2691_v20, %v5684_v6  ;;  %v2790_v44 = vmul.f32 %v5684_v6, %v5684_v6  ;;  %v2718_v14 = vadd.f32 %v2717_v28, %v5686_v16 }
 0x227   : > { %v2885_v50 = vadd.f32 %v2884_v39, %v2791_v2  ;;  %v2792_v15 = vmul.f32 %v5686_v16, %v5686_v16 }
 0x228   : > { %v2872_v29 = vadd.f32 %v2871_v9, %v2790_v44  ;;  %v5697_v53 = vpop.f32.mrb[28].mxu0  ;;  %v5699_v45 = vpop.f32.mrb[28].mxu1 }
 0x229   : > { %v2898_v12 = vadd.f32 %v2897_v32, %v2792_v15  ;;  %6608 = vst [vmem:[#allocation51_spill] sm:$0xff] %v5697_v53  ;;  %6609 = vst [vmem:[#allocation52_spill] sm:$0xff] %v5699_v45  ;;  %v2680_v43 = vsel %vm496_vm0, %v5697_v53, 0.0  ;;  %v2798_v20 = vmul.f32 %v5697_v53, %v5697_v53  ;;  %v2706_v19 = vsel %vm496_vm0, %v5699_v45, 0.0  ;;  %v5709_v28 = vpop.f32.mrb[29].mxu0  ;;  %v5711_v9 = vpop.f32.mrb[29].mxu1 }
 0x22a   : > { %v2800_v2 = vmul.f32 %v5699_v45, %v5699_v45  ;;  %6610 = vst [vmem:[#allocation53_spill] sm:$0xff] %v5709_v28  ;;  %6611 = vst [vmem:[#allocation54_spill] sm:$0xff] %v5711_v9  ;;  %v2681_v31 = vadd.f32 %v2680_v43, %v2679_v62  ;;  %v2707_v51 = vadd.f32 %v2706_v19, %v2705_v10  ;;  %v2693_v39 = vsel %vm496_vm0, %v5709_v28, 0.0  ;;  %v2349_v44 = vpop.f32.mrb[30].mxu0  ;;  %v2491_v15 = vpop.f32.mrb[30].mxu1 }
 0x22b   : > { %v2799_v32 = vmul.f32 %v5709_v28, %v5709_v28  ;;  %v2860_v53 = vsel %vm496_vm0, %v2798_v20, 0.0  ;;  %v2694_v25 = vadd.f32 %v2693_v39, %v2692_v17  ;;  %v2719_v45 = vsel %vm496_vm0, %v5711_v9, 0.0  ;;  %v2350_v6 = vpop.f32.mrb[31].mxu0  ;;  %v2492_v26 = vpop.f32.mrb[31].mxu1 }
 0x22c   : > { %v2886_v16 = vsel %vm496_vm0, %v2800_v2, 0.0  ;;  %v2682_v62 = vrot.slane %v2681_v31, 4  ;;  %v2861_v10 = vadd.f32 %v2860_v53, %v2859_v27  ;;  %v2708_v43 = vrot.slane %v2707_v51, 4 }
 0x22d   : > { %v2887_v19 = vadd.f32 %v2886_v16, %v2885_v50  ;;  %v2695_v46 = vrot.slane %v2694_v25, 4  ;;  %v2873_v30 = vsel %vm496_vm0, %v2799_v32, 0.0  ;;  %v2720_v28 = vadd.f32 %v2719_v45, %v2718_v14 }
 0x22e   : > { %v2801_v44 = vmul.f32 %v5711_v9, %v5711_v9  ;;  %v2683_v20 = vadd.f32 %v2682_v62, %v2681_v31  ;;  %v2862_v15 = vrot.slane %v2861_v10, 4  ;;  %v2709_v2 = vadd.f32 %v2708_v43, %v2707_v51 }
 0x22f   : > { %v2888_v17 = vrot.slane %v2887_v19, 4  ;;  %v2696_v39 = vadd.f32 %v2695_v46, %v2694_v25  ;;  %v2874_v57 = vadd.f32 %v2873_v30, %v2872_v29  ;;  %v2721_v49 = vrot.slane %v2720_v28, 4 }
 0x230   : > { %v2899_v26 = vsel %vm496_vm0, %v2801_v44, 0.0  ;;  %v2684_v6 = vrot.slane %v2683_v20, 2  ;;  %v2863_v27 = vadd.f32 %v2862_v15, %v2861_v10  ;;  %v2710_v53 = vrot.slane %v2709_v2, 2  ;;  %v3987_v50 = vpop.f32.mrb[32].mxu0  ;;  %v5725_v55 = vpop.f32.mrb[32].mxu1 }
 0x231   : > { %v2889_v16 = vadd.f32 %v2888_v17, %v2887_v19  ;;  %v2697_v14 = vrot.slane %v2696_v39, 2  ;;  %v2875_v45 = vrot.slane %v2874_v57, 4  ;;  %v2722_v32 = vadd.f32 %v2721_v49, %v2720_v28  ;;  %v3988_v31 = vpop.f32.mrb[33].mxu0  ;;  %v5727_v62 = vpop.f32.mrb[33].mxu1 }
 0x232   : > { %v2900_v9 = vadd.f32 %v2899_v26, %v2898_v12  ;;  %v2685_v51 = vadd.f32 %v2684_v6, %v2683_v20  ;;  %v2864_v46 = vrot.slane %v2863_v27, 2  ;;  %v2711_v30 = vadd.f32 %v2710_v53, %v2709_v2  ;;  %v3990_v25 = vpop.f32.mrb[34].mxu0  ;;  %v5729_v43 = vpop.f32.mrb[34].mxu1 }
 0x233   : > { %v2890_v29 = vrot.slane %v2889_v16, 2  ;;  %v2698_v10 = vadd.f32 %v2697_v14, %v2696_v39  ;;  %v2876_v44 = vadd.f32 %v2875_v45, %v2874_v57  ;;  %v2723_v19 = vrot.slane %v2722_v32, 2  ;;  %v3991_v17 = vpop.f32.mrb[35].mxu0  ;;  %v2595_v47 = vpop.f32.mrb[35].mxu1 }
 0x234   : > { %v2901_v15 = vrot.slane %v2900_v9, 4  ;;  %v2686_v11 = vrot.slane %v2685_v51, 1  ;;  %v2865_v1 = vadd.f32 %v2864_v46, %v2863_v27  ;;  %v2712_v49 = vrot.slane %v2711_v30, 1 }
 0x235   : > { %v2891_v12 = vadd.f32 %v2890_v29, %v2889_v16  ;;  %v2699_v28 = vrot.slane %v2698_v10, 1  ;;  %v2877_v26 = vrot.slane %v2876_v44, 2  ;;  %v2724_v61 = vadd.f32 %v2723_v19, %v2722_v32 }
 0x236   : > { %v2902_v20 = vadd.f32 %v2901_v15, %v2900_v9  ;;  %v2687_v6 = vadd.f32 %v2686_v11, %v2685_v51  ;;  %v2866_v2 = vrot.slane %v2865_v1, 1  ;;  %v2713_v53 = vadd.f32 %v2712_v49, %v2711_v30 }
 0x237   : > { %v2892_v60 = vrot.slane %v2891_v12, 1  ;;  %v2700_v42 = vadd.f32 %v2699_v28, %v2698_v10  ;;  %v2878_v34 = vadd.f32 %v2877_v26, %v2876_v44  ;;  %v2725_v39 = vrot.slane %v2724_v61, 1 }
 0x238   : > { %v2903_v57 = vrot.slane %v2902_v20, 2  ;;  %v2867_v14 = vadd.f32 %v2866_v2, %v2865_v1  ;;  %v5731_v45 = vmul.f32 0.020408163, %v2687_v6  ;;  %v5733_v33 = vmul.f32 0.020408163, %v2713_v53  ;;  %v3993_v27 = vpop.f32.mrb[36].mxu0 }
 0x239   : > { %v2893_v40 = vadd.f32 %v2892_v60, %v2891_v12  ;;  %v5735_v16 = vpop.f32.mrb[36].mxu1  ;;  %v2879_v46 = vrot.slane %v2878_v34, 1  ;;  %v5737_v32 = vmul.f32 0.020408163, %v2700_v42  ;;  %v2726_v11 = vadd.f32 %v2725_v39, %v2724_v61  ;;  %v3994_v51 = vpop.f32.mrb[37].mxu0 }
 0x23a   : > { %v2904_v9 = vadd.f32 %v2903_v57, %v2902_v20  ;;  %v2608_v30 = vpop.f32.mrb[37].mxu1  ;;  %v2933_v29 = vmul.f32 0.020408163, %v2867_v14  ;;  %v2942_v10 = vmul.f32 %v5731_v45, %v5731_v45  ;;  %v2944_v60 = vmul.f32 %v5733_v33, %v5733_v33  ;;  %v3996_v44 = vpop.f32.mrb[38].mxu0 }
 0x23b   : > { %v2935_v1 = vmul.f32 0.020408163, %v2893_v40  ;;  %v4046_v19 = vpop.f32.mrb[38].mxu1  ;;  %v2880_v15 = vadd.f32 %v2879_v46, %v2878_v34  ;;  %v2943_v49 = vmul.f32 %v5737_v32, %v5737_v32  ;;  %v5745_v12 = vmul.f32 0.020408163, %v2726_v11  ;;  %v3997_v61 = vpop.f32.mrb[39].mxu0 }
 0x23c   : > { %v2905_v42 = vrot.slane %v2904_v9, 1  ;;  %v2611_v28 = vpop.f32.mrb[39].mxu1  ;;  %v2951_v26 = vsub.f32 %v2933_v29, %v2942_v10  ;;  %v3989_v6 = vadd.f32 %v3988_v31, %v3987_v50  ;;  %v3992_v2 = vadd.f32 %v3991_v17, %v3990_v25 }
 0x23d   : > { %v2953_v20 = vsub.f32 %v2935_v1, %v2944_v60  ;;  %v2934_v53 = vmul.f32 0.020408163, %v2880_v15  ;;  %v2945_v39 = vmul.f32 %v5745_v12, %v5745_v12  ;;  %v3995_v57 = vadd.f32 %v3994_v51, %v3993_v27 }
 0x23e   : > { %v2906_v40 = vadd.f32 %v2905_v42, %v2904_v9  ;;  %v2960_v14 = vmax.f32 %v2951_v26, 0.0  ;;  %v5750_v46 = vadd.f32 %v3989_v6, %v5727_v62  ;;  %v5752_v19 = vadd.f32 %v3992_v2, %v2595_v47 }
 0x23f   : > { %v2962_v34 = vmax.f32 %v2953_v20, 0.0  ;;  %v2952_v11 = vsub.f32 %v2934_v53, %v2943_v49  ;;  %v5755_v29 = vadd.f32 %v5725_v55, %v3995_v57  ;;  %v3998_v50 = vadd.f32 %v3997_v61, %v3996_v44 }
 0x240   : > { %6612 = vst [vmem:[#allocation55_spill] sm:$0xff] %v5750_v46  ;;  %6613 = vst [vmem:[#allocation56_spill] sm:$0xff] %v5752_v19  ;;  %v2936_v23 = vmul.f32 0.020408163, %v2906_v40  ;;  %v2969_v31 = vadd.f32 0.001, %v2960_v14  ;;  %v2748_v17 = vmul.f32 %v5750_v46, %v5750_v46  ;;  %v2727_v27 = vadd.f32 %v5752_v19, %v5750_v46 }
 0x241   : > { %6614 = vst [vmem:[#allocation57_spill] sm:$0xff] %v5755_v29  ;;  %v2971_v25 = vadd.f32 0.001, %v2962_v34  ;;  %v3999_v9 = vpop.f32.mrb[40].mxu0  ;;  %v2961_v51 = vmax.f32 %v2952_v11, 0.0  ;;  %v2757_v47 = vmul.f32 %v5752_v19, %v5752_v19  ;;  %v2766_v10 = vmul.f32 %v5755_v29, %v5755_v29  ;;  %v6652_v19 = vld [vmem:[#allocation28_spill] sm:$0xff] }
 0x242   : > { %v2954_v62 = vsub.f32 %v2936_v23, %v2945_v39  ;;  %v4000_v55 = vpop.f32.mrb[41].mxu0  ;;  %4513 = vrsqrt.f32 %v2969_v31  ;;  %v2728_v1 = vadd.f32 %v2727_v27, %v5755_v29  ;;  %v5767_v60 = vadd.f32 %v5729_v43, %v3998_v50  ;;  %v6650_v29 = vld [vmem:[#allocation26_spill] sm:$0xff]  ;;  %v6654_v46 = vld [vmem:[#allocation47_spill] sm:$0xff] }
 0x243   : > { %v4001_v44 = vadd.f32 %v4000_v55, %v3999_v9  ;;  %v4002_v15 = vpop.f32.mrb[42].mxu0  ;;  %4515 = vrsqrt.f32 %v2971_v25  ;;  %v2970_v49 = vadd.f32 0.001, %v2961_v51  ;;  %v2907_v61 = vadd.f32 %v2757_v47, %v2748_v17 }
 0x244   : > { %6615 = vst [vmem:[#allocation58_spill] sm:$0xff] %v5767_v60  ;;  %v2963_v42 = vmax.f32 %v2954_v62, 0.0  ;;  %v4003_v23 = vpop.f32.mrb[43].mxu0  ;;  %v2775_v26 = vmul.f32 %v5767_v60, %v5767_v60  ;;  %v2729_v2 = vadd.f32 %v2728_v1, %v5767_v60  ;;  %v6649_v60 = vld [vmem:[#allocation27_spill] sm:$0xff] }
 0x245   : > { %v4004_v20 = vadd.f32 %v4003_v23, %v4002_v15  ;;  %v5771_v6 = vadd.f32 %v4001_v44, %v2608_v30  ;;  %4517 = vrsqrt.f32 %v2970_v49  ;;  %v2908_v40 = vadd.f32 %v2907_v61, %v2766_v10 }
 0x246   : > { %v2972_v53 = vadd.f32 0.001, %v2963_v42 }
 0x247   : > { %6616 = vst [vmem:[#allocation59_spill] sm:$0xff] %v5771_v6  ;;  %v2730_v43 = vadd.f32 %v2729_v2, %v5771_v6  ;;  %v2784_v39 = vmul.f32 %v5771_v6, %v5771_v6  ;;  %v5777_v57 = vadd.f32 %v4004_v20, %v2611_v28  ;;  %v2909_v14 = vadd.f32 %v2908_v40, %v2775_v26  ;;  %v6648_v6 = vld [vmem:[#allocation25_spill] sm:$0xff] }
 0x248   : > { %4519 = vrsqrt.f32 %v2972_v53  ;;  %v4005_v11 = vpop.f32.mrb[44].mxu0 }
 0x249   : > { %6617 = vst [vmem:[#allocation60_spill] sm:$0xff] %v5777_v57  ;;  %v2731_v34 = vadd.f32 %v2730_v43, %v5777_v57  ;;  %v2793_v30 = vmul.f32 %v5777_v57, %v5777_v57  ;;  %v2910_v50 = vadd.f32 %v2909_v14, %v2784_v39  ;;  %v4006_v31 = vpop.f32.mrb[45].mxu0  ;;  %v6647_v57 = vld [vmem:[#allocation46_spill] sm:$0xff] }
 0x24a   : > { %v4007_v25 = vadd.f32 %v4006_v31, %v4005_v11  ;;  %v4008_v17 = vpop.f32.mrb[46].mxu0  ;;  %v2983_v31 = vld [vmem:[%s4912_s28] sm:$0xff] }
 0x24b   : > { %v2911_v27 = vadd.f32 %v2910_v50, %v2793_v30  ;;  %v4009_v9 = vpop.f32.mrb[47].mxu0  ;;  %v5798_v50 = vsub.s32 0, %v5564_v36  ;;  %v6533_v17 = vsub.s32 2, %v5564_v36 }
 0x24c   : > { %v4514_v51 = vpop.eup %4513  ;;  %v5783_v62 = vadd.f32 %v5735_v16, %v4007_v25  ;;  %v6534_v25 = vsub.s32 1, %v5564_v36 }
 0x24d   : > { %v4516_v28 = vpop.eup %4515  ;;  %6620 = vst [vmem:[#allocation62_spill] sm:$0xff] %v5798_v50 }
 0x24e   : > { %6618 = vst [vmem:[#allocation61_spill] sm:$0xff] %v5783_v62  ;;  %v2732_v47 = vsel %vm496_vm0, %v5783_v62, 0.0  ;;  %v2802_v10 = vmul.f32 %v5783_v62, %v5783_v62  ;;  %v6646_v62 = vld [vmem:[#allocation44_spill] sm:$0xff] }
 0x24f   : > { %v4518_v55 = vpop.eup %4517  ;;  %v2733_v1 = vadd.f32 %v2732_v47, %v2731_v34  ;;  %v6619_v34 = vcombine.low %v5570_v3, %v5573_v5  ;;  %v6531_v47 = vsub.s32 4, %v5564_v36  ;;  %v6530_v3 = vsub.s32 5, %v5564_v36 }
 0x250   : > { %v2996_v44 = vcombine.low %v4514_v51, %v4518_v55  ;;  %v2912_v15 = vsel %vm496_vm0, %v2802_v10, 0.0  ;;  %v6529_v5 = vsub.s32 6, %v5564_v36  ;;  %v6528_v10 = vsub.s32 7, %v5564_v36 }
 0x251   : > { %v2734_v42 = vrot.slane %v2733_v1, 4  ;;  %v2913_v61 = vadd.f32 %v2912_v15, %v2911_v27  ;;  %v3034_v30 = vrot.slane %v6619_v34, %v5567_v58 }
 0x252   : > { %v4520_v49 = vpop.eup %4519  ;;  %v3018_v23 = vrot.slane %v2996_v44, %v5567_v58 }
 0x253   : > { %v2997_v16 = vcombine.low %v4516_v28, %v4520_v49  ;;  %v2735_v26 = vadd.f32 %v2734_v42, %v2733_v1  ;;  %v2914_v20 = vrot.slane %v2913_v61, 4  ;;  %v6532_v28 = vsub.s32 3, %v5564_v36 }
 0x255   : > { %v3025_v2 = vrot.slane %v2997_v16, %v5567_v58  ;;  %v2736_v53 = vrot.slane %v2735_v26, 2  ;;  %v2915_v40 = vadd.f32 %v2914_v20, %v2913_v61 }
 0x257   : > { %v3027_v43 = vcombine.low %v3018_v23, %v3025_v2  ;;  %v2737_v39 = vadd.f32 %v2736_v53, %v2735_v26  ;;  %v2916_v14 = vrot.slane %v2915_v40, 2 }
 0x259   : > { %v3041_v11 = vrot.slane %v3027_v43, %v5567_v58  ;;  %v2738_v27 = vrot.slane %v2737_v39, 1  ;;  %v2917_v9 = vadd.f32 %v2916_v14, %v2915_v40 }
 0x25b   : > { %v3042_v51 = vcombine.low %v3034_v30, %v3041_v11  ;;  %v2739_v55 = vadd.f32 %v2738_v27, %v2737_v39  ;;  %v2918_v1 = vrot.slane %v2917_v9, 1 }
 0x25d   : > { %v3059_v44 = vmul.f32 %v3042_v51, %v2983_v31  ;;  %v5808_v15 = vadd.f32 %v2918_v1, %v2917_v9  ;;  %v5810_v49 = vmul.f32 0.020408163, %v2739_v55 }
 0x25f   : > { %6621 = vst [vmem:[#allocation63_spill] sm:$0xff] %v5808_v15  ;;  %6622 = vst [vmem:[#allocation64_spill] sm:$0xff] %v5810_v49  ;;  %v5813_v42 = vrot.slane %v3059_v44, %v5798_v50  ;;  %v5817_v61 = vrot.slane %v3059_v44, %v6534_v25  ;;  %v5821_v23 = vrot.slane %v3059_v44, %v6533_v17  ;;  %v6642_v17 = vld [vmem:[#allocation22_spill] sm:$0xff]  ;;  %v6643_v25 = vld [vmem:[#allocation24_spill] sm:$0xff] }
 0x260   : > { %v5825_v16 = vrot.slane %v3059_v44, %v6532_v28  ;;  %v5829_v26 = vrot.slane %v3059_v44, %v6531_v47  ;;  %v5833_v20 = vrot.slane %v3059_v44, %v6530_v3  ;;  %v5837_v2 = vrot.slane %v3059_v44, %v6529_v5  ;;  %v6641_v28 = vld [vmem:[#allocation23_spill] sm:$0xff]  ;;  %v6658_v49 = vld [vmem:[#allocation48_spill] sm:$0xff]  ;;  %v6660_v15 = vld [vmem:[#allocation50_spill] sm:$0xff] }
 0x261   : > { %v5841_v53 = vrot.slane %v3059_v44, %v6528_v10  ;;  %v3110_v40 = vmul.f32 %v5813_v42, %v5548_v38  ;;  %v3111_v43 = vmul.f32 %v5817_v61, %v5552_v35  ;;  %v3112_v39 = vmul.f32 %v5821_v23, %v5550_v52  ;;  %v6636_v10 = vld [vmem:[#allocation39_spill] sm:$0xff] }
 0x262   : > { %v3113_v14 = vmul.f32 %v5825_v16, %v5560_v63  ;;  %v3114_v34 = vmul.f32 %v5829_v26, %v5731_v45  ;;  %v3115_v30 = vmul.f32 %v5833_v20, %v5737_v32  ;;  %v3116_v11 = vmul.f32 %v5837_v2, %v5733_v33 }
 0x263   : > { %v3117_v38 = vmul.f32 %v5841_v53, %v5745_v12  ;;  %v3128_v31 = vcombine.low %v3110_v40, %v3111_v43  ;;  %v5861_v52 = vmul.f32 %v5813_v42, %v5400_v4  ;;  %v5865_v63 = vmul.f32 %v5817_v61, %v5404_v54 }
 0x264   : > { %v3129_v35 = vcombine.low %v3112_v39, %v3113_v14  ;;  %v3130_v45 = vcombine.low %v3114_v34, %v3115_v30  ;;  %v5869_v32 = vmul.f32 %v5821_v23, %v5402_v41  ;;  %v5873_v33 = vmul.f32 %v5825_v16, %v5406_v48  ;;  %v6625_v34 = vld [vmem:[#allocation15_spill] sm:$0xff]  ;;  %v6626_v30 = vld [vmem:[#allocation14_spill] sm:$0xff] }
 0x265   : > { %v3131_v27 = vcombine.low %v3116_v11, %v3117_v38  ;;  %v3138_v12 = vrot.slane %v3128_v31, %v5567_v58  ;;  %v5879_v4 = vmul.f32 %v5829_v26, %v5577_v7  ;;  %v5883_v54 = vmul.f32 %v5833_v20, %v5581_v0  ;;  %v3061_v31 = vld [vmem:[%s5947_s8] sm:$0xff] }
 0x266   : > { %v3145_v9 = vrot.slane %v3129_v35, %v5567_v58  ;;  %v3152_v51 = vrot.slane %v3130_v45, %v5567_v58  ;;  %v5889_v48 = vmul.f32 %v5837_v2, %v5579_v8  ;;  %v5893_v55 = vmul.f32 %v5841_v53, %v5583_v13  ;;  %v6628_v35 = vld [vmem:[#allocation35_spill] sm:$0xff] }
 0x267   : > { %v3159_v41 = vrot.slane %v3131_v27, %v5567_v58  ;;  %v5897_v7 = vmul.f32 %v5813_v42, %v5416_v37  ;;  %v5901_v0 = vmul.f32 %v5817_v61, %v5428_v21  ;;  %v5905_v44 = vmul.f32 %v5821_v23, %v5418_v56  ;;  %v6623_v56 = vld [vmem:[#allocation34_spill] sm:$0xff]  ;;  %v6629_v27 = vld [vmem:[#allocation37_spill] sm:$0xff] }
 0x268   : > { %v3160_v1 = vcombine.low %v3138_v12, %v3145_v9  ;;  %v5909_v40 = vmul.f32 %v5825_v16, %v5430_v22  ;;  %v5913_v13 = vmul.f32 %v5829_v26, %v5593_v59  ;;  %v5917_v37 = vmul.f32 %v5833_v20, %v5605_v24  ;;  %v6624_v22 = vld [vmem:[#allocation13_spill] sm:$0xff]  ;;  %v6630_v9 = vld [vmem:[#allocation36_spill] sm:$0xff] }
 0x269   : > { %v3161_v8 = vcombine.low %v3152_v51, %v3159_v41  ;;  %v5922_v43 = vmul.f32 %v5837_v2, %v5595_v18  ;;  %v5926_v39 = vmul.f32 %v5841_v53, %v6623_v56  ;;  %v5930_v14 = vmul.f32 %v5813_v42, %v6624_v22  ;;  %v6627_v18 = vld [vmem:[#allocation16_spill] sm:$0xff]  ;;  %v6631_v41 = vld [vmem:[#allocation38_spill] sm:$0xff]  ;;  %v6632_v56 = vld [vmem:[#allocation17_spill] sm:$0xff] }
 0x26a   : > { %v3168_v21 = vrot.slane %v3160_v1, %v5567_v58  ;;  %v5935_v24 = vmul.f32 %v5817_v61, %v6625_v34  ;;  %v5939_v11 = vmul.f32 %v5821_v23, %v6626_v30  ;;  %v5943_v38 = vmul.f32 %v5825_v16, %v6627_v18  ;;  %v6633_v34 = vld [vmem:[#allocation19_spill] sm:$0xff]  ;;  %v6634_v18 = vld [vmem:[#allocation18_spill] sm:$0xff] }
 0x26b   : > { %v3175_v59 = vrot.slane %v3161_v8, %v5567_v58  ;;  %v5952_v45 = vmul.f32 %v5829_v26, %v6628_v35  ;;  %v5956_v12 = vmul.f32 %v5833_v20, %v6629_v27  ;;  %v5960_v51 = vmul.f32 %v5837_v2, %v6630_v9  ;;  %v6635_v27 = vld [vmem:[#allocation20_spill] sm:$0xff]  ;;  %v6656_v58 = vld [vmem:[#allocation49_spill] sm:$0xff] }
 0x26c   : > { %v5964_v1 = vmul.f32 %v5841_v53, %v6631_v41  ;;  %v5968_v22 = vmul.f32 %v5813_v42, %v6632_v56  ;;  %v5972_v30 = vmul.f32 %v5817_v61, %v6633_v34  ;;  %v5976_v35 = vmul.f32 %v5821_v23, %v6634_v18  ;;  %v6638_v56 = vld [vmem:[#allocation40_spill] sm:$0xff]  ;;  %v6639_v18 = vld [vmem:[#allocation42_spill] sm:$0xff] }
 0x26d   : > { %v3176_v8 = vcombine.low %v3168_v21, %v3175_v59  ;;  %v5980_v9 = vmul.f32 %v5825_v16, %v6635_v27  ;;  %v5984_v21 = vmul.f32 %v5829_v26, %v6636_v10  ;;  %v6637_v59 = vld [vmem:[#allocation41_spill] sm:$0xff]  ;;  %v5992_v34 = vmul.f32 %v5837_v2, %v6638_v56 }
 0x26e   : > { %v5988_v41 = vmul.f32 %v5833_v20, %v6637_v59  ;;  %v5996_v3 = vmul.f32 %v5841_v53, %v6639_v18  ;;  %v6640_v27 = vld [vmem:[#allocation21_spill] sm:$0xff]  ;;  %v6004_v10 = vmul.f32 %v5817_v61, %v6641_v28  ;;  %v6008_v59 = vmul.f32 %v5821_v23, %v6642_v17 }
 0x26f   : > { %v3193_v5 = vsub.f32 %v3061_v31, %v3176_v8  ;;  %v6000_v47 = vmul.f32 %v5813_v42, %v6640_v27  ;;  %v6012_v56 = vmul.f32 %v5825_v16, %v6643_v25  ;;  %v6644_v31 = vld [vmem:[#allocation43_spill] sm:$0xff]  ;;  %v6645_v18 = vld [vmem:[#allocation45_spill] sm:$0xff]  ;;  %v6024_v28 = vmul.f32 %v5837_v2, %v6646_v62 }
 0x270   : > { %v6016_v8 = vmul.f32 %v5829_v26, %v6644_v31  ;;  %v6020_v27 = vmul.f32 %v5833_v20, %v6645_v18  ;;  %v6028_v17 = vmul.f32 %v5841_v53, %v6647_v57  ;;  %v6032_v25 = vmul.f32 %v5813_v42, %v6648_v6 }
 0x271   : > { %v6036_v31 = vmul.f32 %v5817_v61, %v6649_v60  ;;  %v6041_v18 = vmul.f32 %v5821_v23, %v6650_v29  ;;  %v6045_v62 = vmul.f32 %v5825_v16, %v6652_v19  ;;  %v6049_v57 = vmul.f32 %v5829_v26, %v6654_v46 }
 0x272   : > { %v6053_v6 = vmul.f32 %v5833_v20, %v6656_v58  ;;  %v6057_v60 = vmul.f32 %v5837_v2, %v6658_v49  ;;  %v6061_v29 = vmul.f32 %v5841_v53, %v6660_v15 }
 0x273   : > { %6651 = vst [vmem:[#allocation34_spill] sm:$0xff] %v6041_v18  ;;  %6653 = vst [vmem:[#allocation13_spill] sm:$0xff] %v6045_v62  ;;  %v6662_v18 = vld [vmem:[#allocation29_spill] sm:$0xff]  ;;  %v6663_v62 = vld [vmem:[#allocation31_spill] sm:$0xff] }
 0x274   : > { %6655 = vst [vmem:[#allocation15_spill] sm:$0xff] %v6049_v57  ;;  %6657 = vst [vmem:[#allocation14_spill] sm:$0xff] %v6053_v6  ;;  %v6065_v19 = vmul.f32 %v5813_v42, %v6662_v18  ;;  %v6069_v46 = vmul.f32 %v5817_v61, %v6663_v62  ;;  %v6664_v57 = vld [vmem:[#allocation30_spill] sm:$0xff]  ;;  %v6665_v6 = vld [vmem:[#allocation32_spill] sm:$0xff] }
 0x275   : > { %6659 = vst [vmem:[#allocation16_spill] sm:$0xff] %v6057_v60  ;;  %6661 = vst [vmem:[#allocation35_spill] sm:$0xff] %v6061_v29  ;;  %v6073_v58 = vmul.f32 %v5821_v23, %v6664_v57  ;;  %v6077_v49 = vmul.f32 %v5825_v16, %v6665_v6  ;;  %v6666_v60 = vld [vmem:[#allocation51_spill] sm:$0xff]  ;;  %v6667_v29 = vld [vmem:[#allocation53_spill] sm:$0xff]  ;;  %v6096_v57 = vrot.slane %v3193_v5, %v5798_v50  ;;  %v6672_v16 = vsub.s32 1, %v5564_v36 }
 0x276   : > { %v6081_v15 = vmul.f32 %v5829_v26, %v6666_v60  ;;  %v6085_v42 = vmul.f32 %v5833_v20, %v6667_v29  ;;  %v6668_v18 = vld [vmem:[#allocation52_spill] sm:$0xff]  ;;  %v6670_v62 = vld [vmem:[#allocation54_spill] sm:$0xff]  ;;  %v6673_v26 = vsub.s32 2, %v5564_v36  ;;  %v6674_v20 = vsub.s32 3, %v5564_v36 }
 0x277   : > { %v6089_v61 = vmul.f32 %v5837_v2, %v6668_v18  ;;  %v6093_v23 = vmul.f32 %v5841_v53, %v6670_v62  ;;  %v6100_v6 = vrot.slane %v3193_v5, %v6672_v16  ;;  %v6675_v29 = vsub.s32 4, %v5564_v36 }
 0x278   : > { %v6104_v60 = vrot.slane %v3193_v5, %v6673_v26  ;;  %v6108_v2 = vrot.slane %v3193_v5, %v6674_v20  ;;  %v6676_v18 = vsub.s32 5, %v5564_v36  ;;  %v6677_v16 = vsub.s32 6, %v5564_v36 }
 0x279   : > { %6669 = vst [vmem:[#allocation37_spill] sm:$0xff] %v6089_v61  ;;  %6671 = vst [vmem:[#allocation36_spill] sm:$0xff] %v6093_v23  ;;  %v6112_v53 = vrot.slane %v3193_v5, %v6675_v29  ;;  %v6678_v26 = vsub.s32 7, %v5564_v36  ;;  %v3305_v20 = vadd.f32 %v6096_v57, %v5861_v52  ;;  %v3306_v61 = vadd.f32 %v6100_v6, %v5865_v63 }
 0x27a   : > { %v6116_v62 = vrot.slane %v3193_v5, %v6676_v18  ;;  %v6120_v50 = vrot.slane %v3193_v5, %v6677_v16  ;;  %v3307_v29 = vadd.f32 %v6104_v60, %v5869_v32  ;;  %v3308_v18 = vadd.f32 %v6108_v2, %v5873_v33 }
 0x27b   : > { %v6124_v23 = vrot.slane %v3193_v5, %v6678_v26  ;;  %v3309_v16 = vadd.f32 %v6112_v53, %v5879_v4  ;;  %v3314_v63 = vadd.f32 %v6096_v57, %v5897_v7  ;;  %v3315_v32 = vadd.f32 %v6100_v6, %v5901_v0  ;;  %3368 = vst [vmem:[%s6148_s27] sm:$0xff] %v3305_v20 }
 0x27c   : > { %v3310_v36 = vadd.f32 %v6116_v62, %v5883_v54  ;;  %v3311_v5 = vadd.f32 %v6120_v50, %v5889_v48  ;;  %3369 = vst [vmem:[%s6148_s27 + $0x8] sm:$0xff] %v3306_v61  ;;  %v3316_v33 = vadd.f32 %v6104_v60, %v5905_v44  ;;  %v3317_v4 = vadd.f32 %v6108_v2, %v5909_v40  ;;  %v6682_v61 = vld [vmem:[#allocation14_spill] sm:$0xff]  ;;  %v6683_v26 = vld [vmem:[#allocation16_spill] sm:$0xff] }
 0x27d   : > { %v3312_v52 = vadd.f32 %v6124_v23, %v5893_v55  ;;  %v3318_v54 = vadd.f32 %v6112_v53, %v5913_v13  ;;  %v3319_v48 = vadd.f32 %v6116_v62, %v5917_v37  ;;  %3370 = vst [vmem:[%s6148_s27 + $0x10] sm:$0xff] %v3307_v29  ;;  %3371 = vst [vmem:[%s6148_s27 + $0x18] sm:$0xff] %v3308_v18  ;;  %v6684_v29 = vld [vmem:[#allocation35_spill] sm:$0xff] }
 0x27e   : > { %3372 = vst [vmem:[%s6148_s27 + $0x20] sm:$0xff] %v3309_v16  ;;  %3373 = vst [vmem:[%s6148_s27 + $0x28] sm:$0xff] %v3310_v36  ;;  %v3320_v55 = vadd.f32 %v6120_v50, %v5922_v43  ;;  %v3321_v7 = vadd.f32 %v6124_v23, %v5926_v39  ;;  %v3323_v0 = vadd.f32 %v6096_v57, %v5930_v14 }
 0x27f   : > { %v3324_v44 = vadd.f32 %v6100_v6, %v5935_v24  ;;  %3374 = vst [vmem:[%s6148_s27 + $0x30] sm:$0xff] %v3311_v5  ;;  %3375 = vst [vmem:[%s6148_s27 + $0x38] sm:$0xff] %v3312_v52  ;;  %v3325_v40 = vadd.f32 %v6104_v60, %v5939_v11  ;;  %v3326_v13 = vadd.f32 %v6108_v2, %v5943_v38 }
 0x280   : > { %3377 = vst [vmem:[%s6148_s27 + $0x48] sm:$0xff] %v3314_v63  ;;  %3378 = vst [vmem:[%s6148_s27 + $0x50] sm:$0xff] %v3315_v32  ;;  %v3327_v37 = vadd.f32 %v6112_v53, %v5952_v45  ;;  %v3328_v43 = vadd.f32 %v6116_v62, %v5956_v12  ;;  %v3329_v39 = vadd.f32 %v6120_v50, %v5960_v51  ;;  %v6689_v63 = vld [vmem:[#allocation33_spill] sm:$0xff] }
 0x281   : > { %3379 = vst [vmem:[%s6148_s27 + $0x58] sm:$0xff] %v3316_v33  ;;  %3380 = vst [vmem:[%s6148_s27 + $0x60] sm:$0xff] %v3317_v4  ;;  %v3330_v14 = vadd.f32 %v6124_v23, %v5964_v1  ;;  %v3332_v24 = vadd.f32 %v6096_v57, %v5968_v22  ;;  %v3333_v11 = vadd.f32 %v6100_v6, %v5972_v30  ;;  %v2984_v33 = vld [vmem:[%s4912_s28 + $0x8] sm:$0x1] }
 0x282   : > { %3381 = vst [vmem:[%s6148_s27 + $0x68] sm:$0xff] %v3318_v54  ;;  %3382 = vst [vmem:[%s6148_s27 + $0x70] sm:$0xff] %v3319_v48  ;;  %v3334_v38 = vadd.f32 %v6104_v60, %v5976_v35  ;;  %v3335_v45 = vadd.f32 %v6108_v2, %v5980_v9  ;;  %v3336_v12 = vadd.f32 %v6112_v53, %v5984_v21  ;;  %v6690_v48 = vld [vmem:[#allocation62_spill] sm:$0xff] }
 0x283   : > { %3383 = vst [vmem:[%s6148_s27 + $0x78] sm:$0xff] %v3320_v55  ;;  %3384 = vst [vmem:[%s6148_s27 + $0x80] sm:$0xff] %v3321_v7  ;;  %v3337_v51 = vadd.f32 %v6116_v62, %v5988_v41  ;;  %v3338_v1 = vadd.f32 %v6120_v50, %v5992_v34  ;;  %v3339_v22 = vadd.f32 %v6124_v23, %v5996_v3 }
 0x284   : > { %3386 = vst [vmem:[%s6148_s27 + $0x90] sm:$0xff] %v3323_v0  ;;  %3387 = vst [vmem:[%s6148_s27 + $0x98] sm:$0xff] %v3324_v44  ;;  %v3341_v30 = vadd.f32 %v6096_v57, %v6000_v47  ;;  %v3342_v35 = vadd.f32 %v6100_v6, %v6004_v10  ;;  %v3343_v9 = vadd.f32 %v6104_v60, %v6008_v59  ;;  %v6691_v0 = vld [vmem:[#allocation55_spill] sm:$0xff] }
 0x285   : > { %3388 = vst [vmem:[%s6148_s27 + $0xa0] sm:$0xff] %v3325_v40  ;;  %3389 = vst [vmem:[%s6148_s27 + $0xa8] sm:$0xff] %v3326_v13  ;;  %v3344_v3 = vadd.f32 %v6108_v2, %v6012_v56  ;;  %v3345_v47 = vadd.f32 %v6112_v53, %v6016_v8  ;;  %v3346_v21 = vadd.f32 %v6116_v62, %v6020_v27  ;;  %v6679_v56 = vld [vmem:[#allocation34_spill] sm:$0xff]  ;;  %v6680_v27 = vld [vmem:[#allocation13_spill] sm:$0xff] }
 0x286   : > { %3390 = vst [vmem:[%s6148_s27 + $0xb0] sm:$0xff] %v3327_v37  ;;  %3391 = vst [vmem:[%s6148_s27 + $0xb8] sm:$0xff] %v3328_v43  ;;  %v3347_v41 = vadd.f32 %v6120_v50, %v6024_v28  ;;  %v3348_v34 = vadd.f32 %v6124_v23, %v6028_v17  ;;  %v3350_v10 = vadd.f32 %v6096_v57, %v6032_v25  ;;  %v6681_v17 = vld [vmem:[#allocation15_spill] sm:$0xff]  ;;  %v6692_v40 = vld [vmem:[#allocation56_spill] sm:$0xff] }
 0x287   : > { %3392 = vst [vmem:[%s6148_s27 + $0xc0] sm:$0xff] %v3329_v39  ;;  %3393 = vst [vmem:[%s6148_s27 + $0xc8] sm:$0xff] %v3330_v14  ;;  %v3351_v59 = vadd.f32 %v6100_v6, %v6036_v31  ;;  %v3352_v8 = vadd.f32 %v6104_v60, %v6679_v56  ;;  %v3353_v28 = vadd.f32 %v6108_v2, %v6680_v27  ;;  %v6693_v37 = vld [vmem:[#allocation57_spill] sm:$0xff]  ;;  %v6694_v39 = vld [vmem:[#allocation58_spill] sm:$0xff] }
 0x288   : > { %3395 = vst [vmem:[%s6148_s27 + $0xd8] sm:$0xff] %v3332_v24  ;;  %3396 = vst [vmem:[%s6148_s27 + $0xe0] sm:$0xff] %v3333_v11  ;;  %v3354_v25 = vadd.f32 %v6112_v53, %v6681_v17  ;;  %v3355_v31 = vadd.f32 %v6116_v62, %v6682_v61  ;;  %v3356_v20 = vadd.f32 %v6120_v50, %v6683_v26  ;;  %v6695_v24 = vld [vmem:[#allocation59_spill] sm:$0xff]  ;;  %v3458_v27 = vld [vmem:[%s6148_s27 + $0x10] sm:$0xff] (%p6698_p1) }
 0x289   : > { %3397 = vst [vmem:[%s6148_s27 + $0xe8] sm:$0xff] %v3334_v38  ;;  %3398 = vst [vmem:[%s6148_s27 + $0xf0] sm:$0xff] %v3335_v45  ;;  %v3357_v18 = vadd.f32 %v6124_v23, %v6684_v29  ;;  %v3359_v16 = vadd.f32 %v6096_v57, %v6065_v19  ;;  %v3360_v36 = vadd.f32 %v6100_v6, %v6069_v46  ;;  %v6686_v6 = vld [vmem:[#allocation36_spill] sm:$0xff]  ;;  %v3454_v56 = vld [vmem:[%s6148_s27] sm:$0xff] (%p6698_p1) }
 0x28a   : > { %3399 = vst [vmem:[%s6148_s27 + $0xf8] sm:$0xff] %v3336_v12  ;;  %3400 = vst [vmem:[%s6148_s27 + $0x100] sm:$0xff] %v3337_v51  ;;  %v3361_v5 = vadd.f32 %v6104_v60, %v6073_v58  ;;  %v3362_v52 = vadd.f32 %v6108_v2, %v6077_v49  ;;  %v3363_v19 = vadd.f32 %v6112_v53, %v6081_v15  ;;  %v6685_v58 = vld [vmem:[#allocation37_spill] sm:$0xff]  ;;  %v6687_v15 = vld [vmem:[#allocation63_spill] sm:$0xff] }
 0x28b   : > { %3401 = vst [vmem:[%s6148_s27 + $0x108] sm:$0xff] %v3338_v1  ;;  %3402 = vst [vmem:[%s6148_s27 + $0x110] sm:$0xff] %v3339_v22  ;;  %v3364_v46 = vadd.f32 %v6116_v62, %v6085_v42  ;;  %v3365_v57 = vadd.f32 %v6120_v50, %v6685_v58  ;;  %v3366_v49 = vadd.f32 %v6124_v23, %v6686_v6  ;;  %v2937_v42 = vmul.f32 0.020408163, %v6687_v15  ;;  %v6688_v60 = vld [vmem:[#allocation64_spill] sm:$0xff]  ;;  %v6697_v12 = vld [vmem:[#allocation61_spill] sm:$0xff] }
 0x28c   : > { %3404 = vst [vmem:[%s6148_s27 + $0x120] sm:$0xff] %v3341_v30  ;;  %3405 = vst [vmem:[%s6148_s27 + $0x128] sm:$0xff] %v3342_v35  ;;  %v2946_v2 = vmul.f32 %v6688_v60, %v6688_v60  ;;  %v6696_v38 = vld [vmem:[#allocation60_spill] sm:$0xff]  ;;  %v3062_v22 = vld [vmem:[%s5947_s8 + $0x8] sm:$0x1] }
 0x28d   : > { %3406 = vst [vmem:[%s6148_s27 + $0x130] sm:$0xff] %v3343_v9  ;;  %3407 = vst [vmem:[%s6148_s27 + $0x138] sm:$0xff] %v3344_v3  ;;  %v3462_v17 = vld [vmem:[%s6148_s27 + $0x20] sm:$0xff] (%p6698_p1)  ;;  %v3466_v61 = vld [vmem:[%s6148_s27 + $0x30] sm:$0xff] (%p6698_p1) }
 0x28e   : > { %3408 = vst [vmem:[%s6148_s27 + $0x140] sm:$0xff] %v3345_v47  ;;  %3409 = vst [vmem:[%s6148_s27 + $0x148] sm:$0xff] %v3346_v21  ;;  %v2955_v50 = vsub.f32 %v2937_v42, %v2946_v2  ;;  %v3474_v29 = vld [vmem:[%s6148_s27 + $0x50] sm:$0xff] (%p6698_p1)  ;;  %v3494_v6 = vld [vmem:[%s6148_s27 + $0xa0] sm:$0xff] (%p6698_p1) }
 0x28f   : > { %3410 = vst [vmem:[%s6148_s27 + $0x150] sm:$0xff] %v3347_v41  ;;  %3411 = vst [vmem:[%s6148_s27 + $0x158] sm:$0xff] %v3348_v34  ;;  %v3490_v58 = vld [vmem:[%s6148_s27 + $0x90] sm:$0xff] (%p6698_p1)  ;;  %v3500_v42 = vld [vmem:[%s6148_s27 + $0xb8] sm:$0xff] (%p6698_p1) }
 0x290   : > { %3413 = vst [vmem:[%s6148_s27 + $0x168] sm:$0xff] %v3350_v10  ;;  %3414 = vst [vmem:[%s6148_s27 + $0x170] sm:$0xff] %v3351_v59  ;;  %v2964_v53 = vmax.f32 %v2955_v50, 0.0  ;;  %v3498_v15 = vld [vmem:[%s6148_s27 + $0xb0] sm:$0xff] (%p6698_p1)  ;;  %v3504_v2 = vld [vmem:[%s6148_s27 + $0xc8] sm:$0xff] (%p6698_p1) }
 0x291   : > { %3415 = vst [vmem:[%s6148_s27 + $0x178] sm:$0xff] %v3352_v8  ;;  %3416 = vst [vmem:[%s6148_s27 + $0x180] sm:$0xff] %v3353_v28  ;;  %v3456_v8 = vld [vmem:[%s6148_s27 + $0x8] sm:$0xff] (%p6698_p1)  ;;  %v3460_v28 = vld [vmem:[%s6148_s27 + $0x18] sm:$0xff] (%p6698_p1) }
 0x292   : > { %3417 = vst [vmem:[%s6148_s27 + $0x188] sm:$0xff] %v3354_v25  ;;  %3418 = vst [vmem:[%s6148_s27 + $0x190] sm:$0xff] %v3355_v31  ;;  %v2973_v62 = vadd.f32 0.001, %v2964_v53  ;;  %v3464_v25 = vld [vmem:[%s6148_s27 + $0x28] sm:$0xff] (%p6698_p1)  ;;  %v3468_v31 = vld [vmem:[%s6148_s27 + $0x38] sm:$0xff] (%p6698_p1) }
 0x293   : > { %3419 = vst [vmem:[%s6148_s27 + $0x198] sm:$0xff] %v3356_v20  ;;  %3420 = vst [vmem:[%s6148_s27 + $0x1a0] sm:$0xff] %v3357_v18  ;;  %v3472_v20 = vld [vmem:[%s6148_s27 + $0x48] sm:$0xff] (%p6698_p1)  ;;  %v3476_v18 = vld [vmem:[%s6148_s27 + $0x58] sm:$0xff] (%p6698_p1) }
 0x294   : > { %3422 = vst [vmem:[%s6148_s27 + $0x1b0] sm:$0x1] %v3359_v16  ;;  %3423 = vst [vmem:[%s6148_s27 + $0x1b8] sm:$0x1] %v3360_v36  ;;  %4521 = vrsqrt.f32 %v2973_v62  ;;  %v3478_v16 = vld [vmem:[%s6148_s27 + $0x60] sm:$0xff] (%p6698_p1)  ;;  %v3480_v36 = vld [vmem:[%s6148_s27 + $0x68] sm:$0xff] (%p6698_p1) }
 0x295   : > { %3424 = vst [vmem:[%s6148_s27 + $0x1c0] sm:$0x1] %v3361_v5  ;;  %3425 = vst [vmem:[%s6148_s27 + $0x1c8] sm:$0x1] %v3362_v52  ;;  %v3482_v5 = vld [vmem:[%s6148_s27 + $0x70] sm:$0xff] (%p6698_p1)  ;;  %v3484_v52 = vld [vmem:[%s6148_s27 + $0x78] sm:$0xff] (%p6698_p1) }
 0x296   : > { %3426 = vst [vmem:[%s6148_s27 + $0x1d0] sm:$0x1] %v3363_v19  ;;  %3427 = vst [vmem:[%s6148_s27 + $0x1d8] sm:$0x1] %v3364_v46  ;;  %v3486_v19 = vld [vmem:[%s6148_s27 + $0x80] sm:$0xff] (%p6698_p1)  ;;  %v3508_v53 = vld [vmem:[%s6148_s27 + $0xd8] sm:$0xff] (%p6698_p1) }
 0x297   : > { %3428 = vst [vmem:[%s6148_s27 + $0x1e0] sm:$0x1] %v3365_v57  ;;  %3429 = vst [vmem:[%s6148_s27 + $0x1e8] sm:$0x1] %v3366_v49  ;;  %v3492_v57 = vld [vmem:[%s6148_s27 + $0x98] sm:$0xff] (%p6698_p1)  ;;  %v3496_v49 = vld [vmem:[%s6148_s27 + $0xa8] sm:$0xff] (%p6698_p1) }
 0x298   : > { %3455 = vst [vmem:[%s6336_s24] sm:$0xff] (%p6698_p1), %v3454_v56  ;;  %3457 = vst [vmem:[%s6336_s24 + $0x8] sm:$0xff] (%p6698_p1), %v3456_v8  ;;  %v3510_v62 = vld [vmem:[%s6148_s27 + $0xe0] sm:$0xff] (%p6698_p1) }
 0x299   : > { %3459 = vst [vmem:[%s6336_s24 + $0x10] sm:$0xff] (%p6698_p1), %v3458_v27  ;;  %3461 = vst [vmem:[%s6336_s24 + $0x18] sm:$0xff] (%p6698_p1), %v3460_v28 }
 0x29a   : > { %3463 = vst [vmem:[%s6336_s24 + $0x20] sm:$0xff] (%p6698_p1), %v3462_v17  ;;  %3465 = vst [vmem:[%s6336_s24 + $0x28] sm:$0xff] (%p6698_p1), %v3464_v25 }
 0x29b   : > { %3467 = vst [vmem:[%s6336_s24 + $0x30] sm:$0xff] (%p6698_p1), %v3466_v61  ;;  %3469 = vst [vmem:[%s6336_s24 + $0x38] sm:$0xff] (%p6698_p1), %v3468_v31 }
 0x29c   : > { %3473 = vst [vmem:[%s6336_s24 + $0x90] sm:$0xff] (%p6698_p1), %v3472_v20  ;;  %3475 = vst [vmem:[%s6336_s24 + $0x98] sm:$0xff] (%p6698_p1), %v3474_v29 }
 0x29d   : > { %3477 = vst [vmem:[%s6336_s24 + $0xa0] sm:$0xff] (%p6698_p1), %v3476_v18  ;;  %3479 = vst [vmem:[%s6336_s24 + $0xa8] sm:$0xff] (%p6698_p1), %v3478_v16 }
 0x29e   : > { %v4522_v23 = vpop.eup %4521  ;;  %3481 = vst [vmem:[%s6336_s24 + $0xb0] sm:$0xff] (%p6698_p1), %v3480_v36  ;;  %3483 = vst [vmem:[%s6336_s24 + $0xb8] sm:$0xff] (%p6698_p1), %v3482_v5 }
 0x29f   : > { %v3049_v32 = vrot.slane %v4522_v23, %v6689_v63  ;;  %3485 = vst [vmem:[%s6336_s24 + $0xc0] sm:$0xff] (%p6698_p1), %v3484_v52  ;;  %3487 = vst [vmem:[%s6336_s24 + $0xc8] sm:$0xff] (%p6698_p1), %v3486_v19  ;;  %v3512_v23 = vld [vmem:[%s6148_s27 + $0xe8] sm:$0xff] (%p6698_p1) }
 0x2a0   : > { %3491 = vst [vmem:[%s6336_s24 + $0x120] sm:$0xff] (%p6698_p1), %v3490_v58  ;;  %3493 = vst [vmem:[%s6336_s24 + $0x128] sm:$0xff] (%p6698_p1), %v3492_v57 }
 0x2a1   : > { %v3056_v4 = vrot.slane %v3049_v32, %v6689_v63  ;;  %3495 = vst [vmem:[%s6336_s24 + $0x130] sm:$0xff] (%p6698_p1), %v3494_v6  ;;  %3497 = vst [vmem:[%s6336_s24 + $0x138] sm:$0xff] (%p6698_p1), %v3496_v49  ;;  %v3516_v32 = vld [vmem:[%s6148_s27 + $0xf8] sm:$0xff] (%p6698_p1) }
 0x2a2   : > { %3499 = vst [vmem:[%s6336_s24 + $0x140] sm:$0xff] (%p6698_p1), %v3498_v15  ;;  %3501 = vst [vmem:[%s6336_s24 + $0x148] sm:$0xff] (%p6698_p1), %v3500_v42 }
 0x2a3   : > { %v3060_v54 = vmul.f32 %v3056_v4, %v2984_v33  ;;  %3505 = vst [vmem:[%s6336_s24 + $0x158] sm:$0xff] (%p6698_p1), %v3504_v2  ;;  %3509 = vst [vmem:[%s6336_s24 + $0x1b0] sm:$0xff] (%p6698_p1), %v3508_v53  ;;  %v3518_v33 = vld [vmem:[%s6148_s27 + $0x100] sm:$0xff] (%p6698_p1)  ;;  %v3520_v4 = vld [vmem:[%s6148_s27 + $0x108] sm:$0xff] (%p6698_p1) }
 0x2a4   : > { %3511 = vst [vmem:[%s6336_s24 + $0x1b8] sm:$0xff] (%p6698_p1), %v3510_v62  ;;  %3513 = vst [vmem:[%s6336_s24 + $0x1c0] sm:$0xff] (%p6698_p1), %v3512_v23 }
 0x2a5   : > { %v3100_v55 = vrot.slane %v3060_v54, %v6690_v48  ;;  %3517 = vst [vmem:[%s6336_s24 + $0x1d0] sm:$0xff] (%p6698_p1), %v3516_v32  ;;  %3519 = vst [vmem:[%s6336_s24 + $0x1d8] sm:$0xff] (%p6698_p1), %v3518_v33  ;;  %v3522_v54 = vld [vmem:[%s6148_s27 + $0x110] sm:$0xff] (%p6698_p1) }
 0x2a6   : > { %3521 = vst [vmem:[%s6336_s24 + $0x1e0] sm:$0xff] (%p6698_p1), %v3520_v4  ;;  %3523 = vst [vmem:[%s6336_s24 + $0x1e8] sm:$0xff] (%p6698_p1), %v3522_v54 }
 0x2a7   : > { %v3118_v7 = vmul.f32 %v3100_v55, %v6688_v60  ;;  %v3203_v44 = vmul.f32 %v3100_v55, %v6691_v0  ;;  %v3212_v13 = vmul.f32 %v3100_v55, %v6692_v40  ;;  %v3221_v43 = vmul.f32 %v3100_v55, %v6693_v37  ;;  %v3502_v60 = vld [vmem:[%s6148_s27 + $0xc0] sm:$0xff] (%p6698_p1)  ;;  %v3530_v0 = vld [vmem:[%s6148_s27 + $0x130] sm:$0xff] (%p6698_p1) }
 0x2a8   : > { %v3230_v14 = vmul.f32 %v3100_v55, %v6694_v39  ;;  %v3239_v11 = vmul.f32 %v3100_v55, %v6695_v24  ;;  %v3248_v45 = vmul.f32 %v3100_v55, %v6696_v38  ;;  %v3257_v51 = vmul.f32 %v3100_v55, %v6697_v12  ;;  %3503 = vst [vmem:[%s6336_s24 + $0x150] sm:$0xff] (%p6698_p1), %v3502_v60  ;;  %v3526_v55 = vld [vmem:[%s6148_s27 + $0x120] sm:$0xff] (%p6698_p1)  ;;  %v3538_v37 = vld [vmem:[%s6148_s27 + $0x150] sm:$0xff] (%p6698_p1) }
 0x2a9   : > { %v3183_v1 = vrot.slane %v3118_v7, %v6689_v63  ;;  %v3528_v7 = vld [vmem:[%s6148_s27 + $0x128] sm:$0xff] (%p6698_p1)  ;;  %3527 = vst [vmem:[%s6336_s24 + $0x240] sm:$0xff] (%p6698_p1), %v3526_v55  ;;  %3531 = vst [vmem:[%s6336_s24 + $0x250] sm:$0xff] (%p6698_p1), %v3530_v0  ;;  %v3534_v40 = vld [vmem:[%s6148_s27 + $0x140] sm:$0xff] (%p6698_p1) }
 0x2aa   : > { %3529 = vst [vmem:[%s6336_s24 + $0x248] sm:$0xff] (%p6698_p1), %v3528_v7  ;;  %3535 = vst [vmem:[%s6336_s24 + $0x260] sm:$0xff] (%p6698_p1), %v3534_v40  ;;  %v3546_v24 = vld [vmem:[%s6148_s27 + $0x170] sm:$0xff] (%p6698_p1)  ;;  %v3550_v38 = vld [vmem:[%s6148_s27 + $0x180] sm:$0xff] (%p6698_p1) }
 0x2ab   : > { %v3190_v30 = vrot.slane %v3183_v1, %v6689_v63  ;;  %v3514_v63 = vld [vmem:[%s6148_s27 + $0xf0] sm:$0xff] (%p6698_p1)  ;;  %3539 = vst [vmem:[%s6336_s24 + $0x270] sm:$0xff] (%p6698_p1), %v3538_v37  ;;  %3547 = vst [vmem:[%s6336_s24 + $0x2d8] sm:$0xff] (%p6698_p1), %v3546_v24  ;;  %v3558_v1 = vld [vmem:[%s6148_s27 + $0x1a0] sm:$0xff] (%p6698_p1) }
 0x2ac   : > { %3515 = vst [vmem:[%s6336_s24 + $0x1c8] sm:$0xff] (%p6698_p1), %v3514_v63  ;;  %v3554_v12 = vld [vmem:[%s6148_s27 + $0x190] sm:$0xff] (%p6698_p1)  ;;  %3551 = vst [vmem:[%s6336_s24 + $0x2e8] sm:$0xff] (%p6698_p1), %v3550_v38 }
 0x2ad   : > { %v3194_v35 = vsub.f32 %v3062_v22, %v3190_v30  ;;  %3555 = vst [vmem:[%s6336_s24 + $0x2f8] sm:$0xff] (%p6698_p1), %v3554_v12  ;;  %3559 = vst [vmem:[%s6336_s24 + $0x308] sm:$0xff] (%p6698_p1), %v3558_v1  ;;  %v3562_v30 = vld [vmem:[%s6148_s27 + $0x1b0] sm:$0xff] (%p6698_p1) }
 0x2ae   : > { %3563 = vst [vmem:[%s6336_s24 + $0x360] sm:$0xff] (%p6698_p1), %v3562_v30 }
 0x2af   : > { %v3295_v9 = vrot.slane %v3194_v35, %v6690_v48  ;;  %v3564_v35 = vld [vmem:[%s6148_s27 + $0x1b8] sm:$0xff] (%p6698_p1) }
 0x2b0   : > { %3437 = sbr.rel (!%p6698_p1) target bundleno = 704 (0x2c0), region = 60  ;;  %3565 = vst [vmem:[%s6336_s24 + $0x368] sm:$0xff] (%p6698_p1), %v3564_v35 }
 0x2b1   : > { %v3313_v3 = vadd.f32 %v3295_v9, %v3203_v44  ;;  %v3322_v47 = vadd.f32 %v3295_v9, %v3212_v13  ;;  %v3331_v21 = vadd.f32 %v3295_v9, %v3221_v43  ;;  %v3340_v41 = vadd.f32 %v3295_v9, %v3230_v14  ;;  %v3532_v44 = vld [vmem:[%s6148_s27 + $0x138] sm:$0xff] (%p6698_p1)  ;;  %v3536_v13 = vld [vmem:[%s6148_s27 + $0x148] sm:$0xff] (%p6698_p1) }
 0x2b2   : > { %v3349_v34 = vadd.f32 %v3295_v9, %v3239_v11  ;;  %v3358_v10 = vadd.f32 %v3295_v9, %v3248_v45  ;;  %v3367_v59 = vadd.f32 %v3295_v9, %v3257_v51  ;;  %3533 = vst [vmem:[%s6336_s24 + $0x258] sm:$0xff] (%p6698_p1), %v3532_v44  ;;  %3537 = vst [vmem:[%s6336_s24 + $0x268] sm:$0xff] (%p6698_p1), %v3536_v13  ;;  %v3540_v43 = vld [vmem:[%s6148_s27 + $0x158] sm:$0xff] (%p6698_p1)  ;;  %v3544_v14 = vld [vmem:[%s6148_s27 + $0x168] sm:$0xff] (%p6698_p1) }
 0x2b3   : > { %3376 = vst [vmem:[%s6148_s27 + $0x40] sm:$0xff] %v3313_v3  ;;  %3385 = vst [vmem:[%s6148_s27 + $0x88] sm:$0xff] %v3322_v47  ;;  %v3548_v11 = vld [vmem:[%s6148_s27 + $0x178] sm:$0xff] (%p6698_p1)  ;;  %v3552_v45 = vld [vmem:[%s6148_s27 + $0x188] sm:$0xff] (%p6698_p1) }
 0x2b4   : > { %3394 = vst [vmem:[%s6148_s27 + $0xd0] sm:$0xff] %v3331_v21  ;;  %3403 = vst [vmem:[%s6148_s27 + $0x118] sm:$0xff] %v3340_v41  ;;  %v3556_v51 = vld [vmem:[%s6148_s27 + $0x198] sm:$0xff] (%p6698_p1)  ;;  %v3566_v9 = vld [vmem:[%s6148_s27 + $0x1c0] sm:$0xff] (%p6698_p1) }
 0x2b5   : > { %3412 = vst [vmem:[%s6148_s27 + $0x160] sm:$0xff] %v3349_v34  ;;  %3421 = vst [vmem:[%s6148_s27 + $0x1a8] sm:$0xff] %v3358_v10  ;;  %v3568_v3 = vld [vmem:[%s6148_s27 + $0x1c8] sm:$0xff] (%p6698_p1)  ;;  %v3570_v47 = vld [vmem:[%s6148_s27 + $0x1d0] sm:$0xff] (%p6698_p1) }
 0x2b6   : > { %3430 = vst [vmem:[%s6148_s27 + $0x1f0] sm:$0x1] %v3367_v59  ;;  %3541 = vst [vmem:[%s6336_s24 + $0x278] sm:$0xff] (%p6698_p1), %v3540_v43  ;;  %v3572_v21 = vld [vmem:[%s6148_s27 + $0x1d8] sm:$0xff] (%p6698_p1)  ;;  %v3574_v41 = vld [vmem:[%s6148_s27 + $0x1e0] sm:$0xff] (%p6698_p1) }
 0x2b7   : > { %3545 = vst [vmem:[%s6336_s24 + $0x2d0] sm:$0xff] %v3544_v14  ;;  %3549 = vst [vmem:[%s6336_s24 + $0x2e0] sm:$0xff] %v3548_v11  ;;  %v3576_v34 = vld [vmem:[%s6148_s27 + $0x1e8] sm:$0xff] }
 0x2b8   : > { %3553 = vst [vmem:[%s6336_s24 + $0x2f0] sm:$0xff] %v3552_v45  ;;  %3557 = vst [vmem:[%s6336_s24 + $0x300] sm:$0xff] %v3556_v51 }
 0x2b9   : > { %3567 = vst [vmem:[%s6336_s24 + $0x370] sm:$0xff] %v3566_v9  ;;  %3569 = vst [vmem:[%s6336_s24 + $0x378] sm:$0xff] %v3568_v3 }
 0x2ba   : > { %v3470_v26 = vld [vmem:[%s6148_s27 + $0x40] sm:$0xff]  ;;  %v3488_v46 = vld [vmem:[%s6148_s27 + $0x88] sm:$0xff]  ;;  %3571 = vst [vmem:[%s6336_s24 + $0x380] sm:$0xff] %v3570_v47  ;;  %3573 = vst [vmem:[%s6336_s24 + $0x388] sm:$0xff] %v3572_v21 }
 0x2bb   : > { %3471 = vst [vmem:[%s6336_s24 + $0x40] sm:$0xff] %v3470_v26  ;;  %3489 = vst [vmem:[%s6336_s24 + $0xd0] sm:$0xff] %v3488_v46  ;;  %v3506_v50 = vld [vmem:[%s6148_s27 + $0xd0] sm:$0xff]  ;;  %v3524_v48 = vld [vmem:[%s6148_s27 + $0x118] sm:$0xff] }
 0x2bc   : > { %3507 = vst [vmem:[%s6336_s24 + $0x160] sm:$0xff] %v3506_v50  ;;  %3525 = vst [vmem:[%s6336_s24 + $0x1f0] sm:$0xff] %v3524_v48  ;;  %v3542_v39 = vld [vmem:[%s6148_s27 + $0x160] sm:$0xff]  ;;  %v3560_v22 = vld [vmem:[%s6148_s27 + $0x1a8] sm:$0xff] }
 0x2bd   : > { %3543 = vst [vmem:[%s6336_s24 + $0x280] sm:$0xff] %v3542_v39  ;;  %3561 = vst [vmem:[%s6336_s24 + $0x310] sm:$0xff] %v3560_v22  ;;  %v3578_v10 = vld [vmem:[%s6148_s27 + $0x1f0] sm:$0xff] }
 0x2be   : > { %3575 = vst [vmem:[%s6336_s24 + $0x390] sm:$0xff] %v3574_v41  ;;  %3577 = vst [vmem:[%s6336_s24 + $0x398] sm:$0xff] %v3576_v34 }
 0x2bf   : > { %3579 = vst [vmem:[%s6336_s24 + $0x3a0] sm:$0xff] %v3578_v10 }
 0x2c0 PF: > { %s21_s23 = sadd.s32 1, %s4673_s23   ;;  %s6699_s21 = sld [smem:[#allocation12_spill]] }
 0x2c1   : > { %p18_p5 = scmp.ge.s32.totalorder %s21_s23, 4   ;;  %s6700_s29 = sld [smem:[#allocation11_spill]] }
 0x2c2   : > { %s6701_s18 = smov %s4657_s19  ;;  %s6702_s19 = smov %s4661_s20 }
 0x2c3   :  { %20 = sbr.rel (!%p18_p5) target bundleno = 9 (0x9), region = 131 }
 0x2c6   : > { %s6703_s20 = smov %s6699_s21  ;;  %s6704_s21 = smov %s4669_s22 }
 0x2c7   : > { %s6705_s22 = smov %s6700_s29 }
 0x2ca   :  { %3595 = vsyncpa [#allocation4], 1 }
 0x2cb   :  { %3597 = vsyncpa [#allocation4 + $0x1], 1 }
 0x2cc   :  { %3598 = vsyncpa [#allocation6], 1 }
 0x2cd   :  { %3600 = vsyncpa [#allocation6 + $0x1], 1 }

</bundles_post_ra>
